<compile_context>
chip_gen: v5e
topology: v5e:2x2
jax: 0.10.0
libtpu: 0.0.40
codegen_flags: <defaults>
</compile_context>

<pallas_src>
import functools

import numpy as np

import jax
import jax.numpy as jnp
from jax.experimental import pallas as pl
from jax.experimental.pallas import tpu as pltpu


# ----------------------------- fused kernel ---------------------------------

def mha_kernel(x_ref, mask_ref, wqkv_ref, bqkv_ref, wfc_ref, bfc_ref,
               gamma_ref, beta_ref, o_ref, *, num_head, dim_head, scale, eps):
    x = x_ref[...]                                        # [M, D] f32
    M, D = x.shape

    # ---- fused QKV projection: one lane-dense [M, 3D] MXU matmul ----
    qkv = jnp.dot(x, wqkv_ref[...], preferred_element_type=jnp.float32)
    qkv = qkv + bqkv_ref[...]

    # Per-head dim_head-wide channel chunks (static lane slices, no reshape).
    q = [qkv[:, h * dim_head:(h + 1) * dim_head] for h in range(num_head)]
    k = [qkv[:, D + h * dim_head:D + (h + 1) * dim_head] for h in range(num_head)]
    v = [qkv[:, 2 * D + h * dim_head:2 * D + (h + 1) * dim_head]
         for h in range(num_head)]

    # ---- legacy-.view() group attention via block-diagonal mask bias ----
    # Pseudo-token (row a, chunk i) attends to every (row b, chunk j) with
    # a // block_rows == b // block_rows; mask_ref holds 0 / -1e30 for that,
    # so exp() drives out-of-group probabilities to exactly 0.
    bias = mask_ref[...]                                  # [M, M] f32

    ctx = []
    for i in range(num_head):
        s = [jnp.einsum("ac,bc->ab", q[i], k[j],
                        preferred_element_type=jnp.float32) * scale + bias
             for j in range(num_head)]
        m = s[0]
        for sj in s[1:]:
            m = jnp.maximum(m, sj)
        m = jnp.max(m, axis=-1, keepdims=True)            # [M, 1]
        p = [jnp.exp(sj - m) for sj in s]                  # masked entries -> 0
        denom = p[0].sum(axis=-1, keepdims=True)
        for pj in p[1:]:
            denom = denom + pj.sum(axis=-1, keepdims=True)
        inv = pl.reciprocal(denom, approx=False)
        acc = jnp.dot(p[0], v[0], preferred_element_type=jnp.float32)
        for j in range(1, num_head):
            acc = acc + jnp.dot(p[j], v[j], preferred_element_type=jnp.float32)
        ctx.append(acc * inv)                              # [M, dim_head]

    # ---- output projection + residual + LayerNorm (all fused) ----
    # ctx2d @ Wfc^T == sum_i ctx_i @ Wfc^T[i*dh:(i+1)*dh, :]  (no reshape).
    wfc = wfc_ref[...]                                     # [D, D]
    y = x + bfc_ref[...]
    for i in range(num_head):
        y = y + jnp.dot(ctx[i], wfc[i * dim_head:(i + 1) * dim_head, :],
                        preferred_element_type=jnp.float32)
    mu = jnp.mean(y, axis=-1, keepdims=True)
    var = jnp.mean(jnp.square(y - mu), axis=-1, keepdims=True)
    yhat = (y - mu) * jax.lax.rsqrt(var + eps)
    o_ref[...] = (yhat * gamma_ref[...] + beta_ref[...]).astype(o_ref.dtype)


# ----------------------------- wrappers -------------------------------------

def prepare_params(params):
    """One-time parameter packing (hoisted out of the jitted forward)."""
    D = params["wq_t"].shape[0]
    return {
        "w_qkv_t": jnp.concatenate(
            [params["wq_t"], params["wk_t"], params["wv_t"]], axis=1),
        "b_qkv": jnp.concatenate(
            [params["bq"], params["bk"], params["bv"]], axis=0).reshape(1, 3 * D),
        "w_fc_t": params["wfc_t"],
        "b_fc": params["bfc"].reshape(1, D),
        "gamma": params["gamma"].reshape(1, D),
        "beta": params["beta"].reshape(1, D),
    }


def _group_mask_bias(n_rows, block_rows):
    """0 inside a view-group (block of consecutive rows), -1e30 outside."""
    blk = np.arange(n_rows) // block_rows
    bias = np.where(blk[:, None] == blk[None, :], 0.0, -1e30)
    return jnp.asarray(bias, dtype=jnp.float32)


def multi_head_attention(x, prep, num_head, eps=1e-5):
    """Forward pass of Multi_Head_Attention (dropout p=0.0 -> identity)."""
    B, L, D = x.shape
    dim_head = D // num_head
    # The legacy .view(batch*num_head, -1, dim_head) groups L//num_head whole
    # rows of the [B*L, D] activation per attention group; the block-diagonal
    # mask below encodes exactly that grouping.
    assert L % num_head == 0, "row-block decomposition needs L % num_head == 0"
    # TODO(synk): L % num_head != 0 would split a row across two view-groups and
    # would need an in-kernel relayout; not supported here.
    block_rows = L // num_head
    M = B * L

    x2d = x.reshape(M, D)
    mask_bias = _group_mask_bias(M, block_rows)

    kernel = functools.partial(
        mha_kernel, num_head=num_head, dim_head=dim_head,
        scale=dim_head ** -0.5, eps=eps)

    out2d = pl.pallas_call(
        kernel,
        out_shape=jax.ShapeDtypeStruct((M, D), x.dtype),
        in_specs=[pl.BlockSpec(memory_space=pltpu.MemorySpace.VMEM)
                  for _ in range(8)],
        out_specs=pl.BlockSpec(memory_space=pltpu.MemorySpace.VMEM),
    )(x2d, mask_bias, prep["w_qkv_t"], prep["b_qkv"], prep["w_fc_t"],
      prep["b_fc"], prep["gamma"], prep["beta"])
    return out2d.reshape(B, L, D)


# --------------------------- pure-JAX reference ------------------------------

def reference(x, params, num_head):
    B, L, D = x.shape
    dh = D // num_head
    Q = x @ params["wq_t"] + params["bq"]
    K = x @ params["wk_t"] + params["bk"]
    V = x @ params["wv_t"] + params["bv"]
    Q = Q.reshape(B * num_head, -1, dh)
    K = K.reshape(B * num_head, -1, dh)
    V = V.reshape(B * num_head, -1, dh)
    s = jnp.einsum("gld,gmd->glm", Q, K) * (dh ** -0.5)
    p = jax.nn.softmax(s, axis=-1)
    ctx = jnp.einsum("glm,gmd->gld", p, V).reshape(B, -1, dh * num_head)
    out = ctx @ params["wfc_t"] + params["bfc"] + x
    mu = out.mean(-1, keepdims=True)
    var = ((out - mu) ** 2).mean(-1, keepdims=True)
    return (out - mu) / jnp.sqrt(var + 1e-5) * params["gamma"] + params["beta"]


# --------------------------------- main --------------------------------------

if __name__ == "__main__":
    B, L, D, H = 2, 8, 32, 4  # dim_model=32, num_head=4, dim_head=8

    key = jax.random.PRNGKey(0)
    keys = jax.random.split(key, 10)
    s = 0.1
    params = {
        # nn.Linear weights are (out, in); stored pre-transposed (in, out).
        "wq_t":  s * jax.random.normal(keys[0], (D, D), jnp.float32),
        "bq":    s * jax.random.normal(keys[1], (D,), jnp.float32),
        "wk_t":  s * jax.random.normal(keys[2], (D, D), jnp.float32),
        "bk":    s * jax.random.normal(keys[3], (D,), jnp.float32),
        "wv_t":  s * jax.random.normal(keys[4], (D, D), jnp.float32),
        "bv":    s * jax.random.normal(keys[5], (D,), jnp.float32),
        "wfc_t": s * jax.random.normal(keys[6], (D, D), jnp.float32),
        "bfc":   s * jax.random.normal(keys[7], (D,), jnp.float32),
        "gamma": jnp.ones((D,), jnp.float32),
        "beta":  jnp.zeros((D,), jnp.float32),
    }

    x = jax.random.normal(keys[8], (B, L, D), jnp.float32)

    prep = prepare_params(params)        # one-time weight packing, outside jit
    fwd = jax.jit(functools.partial(multi_head_attention, num_head=H))
    out = jax.block_until_ready(fwd(x, prep))

    ref = reference(x, params, H)
    assert out.shape == (B, L, D)
    err = float(jnp.max(jnp.abs(out - ref)))
    assert err < 1e-4, f"mismatch vs pure-JAX reference: {err}"

    print("KERNEL_OK")
</pallas_src>

<mosaic_0001>
module attributes {stable_mosaic.version = 11 : i64} {
  func.func @mha_kernel(%arg0: memref<16x32xf32, #tpu.memory_space<vmem>>, %arg1: memref<16x16xf32, #tpu.memory_space<vmem>>, %arg2: memref<32x96xf32, #tpu.memory_space<vmem>>, %arg3: memref<1x96xf32, #tpu.memory_space<vmem>>, %arg4: memref<32x32xf32, #tpu.memory_space<vmem>>, %arg5: memref<1x32xf32, #tpu.memory_space<vmem>>, %arg6: memref<1x32xf32, #tpu.memory_space<vmem>>, %arg7: memref<1x32xf32, #tpu.memory_space<vmem>>, %arg8: memref<16x32xf32, #tpu.memory_space<vmem>>) attributes {dimension_semantics = [], scalar_prefetch = 0 : i64, scratch_operands = 0 : i64, tpu.core_type = #tpu.core_type<tc>} {
    %c0 = arith.constant 0 : index
    %c0_0 = arith.constant 0 : index
    %0 = vector.load %arg0[%c0, %c0_0] : memref<16x32xf32, #tpu.memory_space<vmem>>, vector<16x32xf32>
    %c0_1 = arith.constant 0 : index
    %c0_2 = arith.constant 0 : index
    %1 = vector.load %arg2[%c0_1, %c0_2] : memref<32x96xf32, #tpu.memory_space<vmem>>, vector<32x96xf32>
    %cst = arith.constant dense<0.000000e+00> : vector<16x96xf32>
    %2 = tpu.matmul %0, %1, %cst {dimension_numbers = #tpu.dot_dimension_numbers<[1], [0], [0], [1], [0, 0, 1, 1], [], []>} : vector<16x32xf32>, vector<32x96xf32>, vector<16x96xf32> -> vector<16x96xf32>
    %c0_3 = arith.constant 0 : index
    %c0_4 = arith.constant 0 : index
    %3 = vector.load %arg3[%c0_3, %c0_4] : memref<1x96xf32, #tpu.memory_space<vmem>>, vector<1x96xf32>
    %4 = vector.broadcast %3 : vector<1x96xf32> to vector<16x96xf32>
    %5 = arith.addf %2, %4 : vector<16x96xf32>
    %6 = vector.extract_strided_slice %5 {offsets = [0, 0], sizes = [16, 8], strides = [1, 1]} : vector<16x96xf32> to vector<16x8xf32>
    %7 = vector.extract_strided_slice %5 {offsets = [0, 8], sizes = [16, 8], strides = [1, 1]} : vector<16x96xf32> to vector<16x8xf32>
    %8 = vector.extract_strided_slice %5 {offsets = [0, 16], sizes = [16, 8], strides = [1, 1]} : vector<16x96xf32> to vector<16x8xf32>
    %9 = vector.extract_strided_slice %5 {offsets = [0, 24], sizes = [16, 8], strides = [1, 1]} : vector<16x96xf32> to vector<16x8xf32>
    %10 = vector.extract_strided_slice %5 {offsets = [0, 32], sizes = [16, 8], strides = [1, 1]} : vector<16x96xf32> to vector<16x8xf32>
    %11 = vector.extract_strided_slice %5 {offsets = [0, 40], sizes = [16, 8], strides = [1, 1]} : vector<16x96xf32> to vector<16x8xf32>
    %12 = vector.extract_strided_slice %5 {offsets = [0, 48], sizes = [16, 8], strides = [1, 1]} : vector<16x96xf32> to vector<16x8xf32>
    %13 = vector.extract_strided_slice %5 {offsets = [0, 56], sizes = [16, 8], strides = [1, 1]} : vector<16x96xf32> to vector<16x8xf32>
    %14 = vector.extract_strided_slice %5 {offsets = [0, 64], sizes = [16, 8], strides = [1, 1]} : vector<16x96xf32> to vector<16x8xf32>
    %15 = vector.extract_strided_slice %5 {offsets = [0, 72], sizes = [16, 8], strides = [1, 1]} : vector<16x96xf32> to vector<16x8xf32>
    %16 = vector.extract_strided_slice %5 {offsets = [0, 80], sizes = [16, 8], strides = [1, 1]} : vector<16x96xf32> to vector<16x8xf32>
    %17 = vector.extract_strided_slice %5 {offsets = [0, 88], sizes = [16, 8], strides = [1, 1]} : vector<16x96xf32> to vector<16x8xf32>
    %c0_5 = arith.constant 0 : index
    %c0_6 = arith.constant 0 : index
    %18 = vector.load %arg1[%c0_5, %c0_6] : memref<16x16xf32, #tpu.memory_space<vmem>>, vector<16x16xf32>
    "tpu.trace_start"() <{level = 10 : i32, message = "ac,bc->ab"}> : () -> ()
    %cst_7 = arith.constant dense<0.000000e+00> : vector<16x16xf32>
    %19 = tpu.matmul %6, %10, %cst_7 {dimension_numbers = #tpu.dot_dimension_numbers<[1], [1], [0], [0], [0, 0, 1, 0], [], []>} : vector<16x8xf32>, vector<16x8xf32>, vector<16x16xf32> -> vector<16x16xf32>
    "tpu.trace_stop"() : () -> ()
    %cst_8 = arith.constant 0.353553385 : f32
    %20 = vector.broadcast %cst_8 : f32 to vector<16x16xf32>
    %21 = arith.mulf %19, %20 : vector<16x16xf32>
    %22 = arith.addf %21, %18 : vector<16x16xf32>
    "tpu.trace_start"() <{level = 10 : i32, message = "ac,bc->ab"}> : () -> ()
    %cst_9 = arith.constant dense<0.000000e+00> : vector<16x16xf32>
    %23 = tpu.matmul %6, %11, %cst_9 {dimension_numbers = #tpu.dot_dimension_numbers<[1], [1], [0], [0], [0, 0, 1, 0], [], []>} : vector<16x8xf32>, vector<16x8xf32>, vector<16x16xf32> -> vector<16x16xf32>
    "tpu.trace_stop"() : () -> ()
    %cst_10 = arith.constant 0.353553385 : f32
    %24 = vector.broadcast %cst_10 : f32 to vector<16x16xf32>
    %25 = arith.mulf %23, %24 : vector<16x16xf32>
    %26 = arith.addf %25, %18 : vector<16x16xf32>
    "tpu.trace_start"() <{level = 10 : i32, message = "ac,bc->ab"}> : () -> ()
    %cst_11 = arith.constant dense<0.000000e+00> : vector<16x16xf32>
    %27 = tpu.matmul %6, %12, %cst_11 {dimension_numbers = #tpu.dot_dimension_numbers<[1], [1], [0], [0], [0, 0, 1, 0], [], []>} : vector<16x8xf32>, vector<16x8xf32>, vector<16x16xf32> -> vector<16x16xf32>
    "tpu.trace_stop"() : () -> ()
    %cst_12 = arith.constant 0.353553385 : f32
    %28 = vector.broadcast %cst_12 : f32 to vector<16x16xf32>
    %29 = arith.mulf %27, %28 : vector<16x16xf32>
    %30 = arith.addf %29, %18 : vector<16x16xf32>
    "tpu.trace_start"() <{level = 10 : i32, message = "ac,bc->ab"}> : () -> ()
    %cst_13 = arith.constant dense<0.000000e+00> : vector<16x16xf32>
    %31 = tpu.matmul %6, %13, %cst_13 {dimension_numbers = #tpu.dot_dimension_numbers<[1], [1], [0], [0], [0, 0, 1, 0], [], []>} : vector<16x8xf32>, vector<16x8xf32>, vector<16x16xf32> -> vector<16x16xf32>
    "tpu.trace_stop"() : () -> ()
    %cst_14 = arith.constant 0.353553385 : f32
    %32 = vector.broadcast %cst_14 : f32 to vector<16x16xf32>
    %33 = arith.mulf %31, %32 : vector<16x16xf32>
    %34 = arith.addf %33, %18 : vector<16x16xf32>
    %35 = arith.maximumf %22, %26 : vector<16x16xf32>
    %36 = arith.maximumf %35, %30 : vector<16x16xf32>
    %37 = arith.maximumf %36, %34 : vector<16x16xf32>
    %cst_15 = arith.constant dense<0xFF800000> : vector<16xf32>
    %38 = vector.multi_reduction <maximumf>, %37, %cst_15 [1] : vector<16x16xf32> to vector<16xf32>
    %39 = vector.shape_cast %38 : vector<16xf32> to vector<16x1xf32>
    %40 = vector.broadcast %39 : vector<16x1xf32> to vector<16x16xf32>
    %41 = arith.subf %22, %40 : vector<16x16xf32>
    %42 = math.exp %41 : vector<16x16xf32>
    %43 = vector.broadcast %39 : vector<16x1xf32> to vector<16x16xf32>
    %44 = arith.subf %26, %43 : vector<16x16xf32>
    %45 = math.exp %44 : vector<16x16xf32>
    %46 = vector.broadcast %39 : vector<16x1xf32> to vector<16x16xf32>
    %47 = arith.subf %30, %46 : vector<16x16xf32>
    %48 = math.exp %47 : vector<16x16xf32>
    %49 = vector.broadcast %39 : vector<16x1xf32> to vector<16x16xf32>
    %50 = arith.subf %34, %49 : vector<16x16xf32>
    %51 = math.exp %50 : vector<16x16xf32>
    %cst_16 = arith.constant dense<0.000000e+00> : vector<16xf32>
    %52 = vector.multi_reduction <add>, %42, %cst_16 [1] : vector<16x16xf32> to vector<16xf32>
    %53 = vector.shape_cast %52 : vector<16xf32> to vector<16x1xf32>
    %cst_17 = arith.constant dense<0.000000e+00> : vector<16xf32>
    %54 = vector.multi_reduction <add>, %45, %cst_17 [1] : vector<16x16xf32> to vector<16xf32>
    %55 = vector.shape_cast %54 : vector<16xf32> to vector<16x1xf32>
    %56 = arith.addf %53, %55 : vector<16x1xf32>
    %cst_18 = arith.constant dense<0.000000e+00> : vector<16xf32>
    %57 = vector.multi_reduction <add>, %48, %cst_18 [1] : vector<16x16xf32> to vector<16xf32>
    %58 = vector.shape_cast %57 : vector<16xf32> to vector<16x1xf32>
    %59 = arith.addf %56, %58 : vector<16x1xf32>
    %cst_19 = arith.constant dense<0.000000e+00> : vector<16xf32>
    %60 = vector.multi_reduction <add>, %51, %cst_19 [1] : vector<16x16xf32> to vector<16xf32>
    %61 = vector.shape_cast %60 : vector<16xf32> to vector<16x1xf32>
    %62 = arith.addf %59, %61 : vector<16x1xf32>
    %63 = tpu.reciprocal %62 : vector<16x1xf32> -> vector<16x1xf32>
    %cst_20 = arith.constant dense<0.000000e+00> : vector<16x8xf32>
    %64 = tpu.matmul %42, %14, %cst_20 {dimension_numbers = #tpu.dot_dimension_numbers<[1], [0], [0], [1], [0, 0, 1, 1], [], []>} : vector<16x16xf32>, vector<16x8xf32>, vector<16x8xf32> -> vector<16x8xf32>
    %cst_21 = arith.constant dense<0.000000e+00> : vector<16x8xf32>
    %65 = tpu.matmul %45, %15, %cst_21 {dimension_numbers = #tpu.dot_dimension_numbers<[1], [0], [0], [1], [0, 0, 1, 1], [], []>} : vector<16x16xf32>, vector<16x8xf32>, vector<16x8xf32> -> vector<16x8xf32>
    %66 = arith.addf %64, %65 : vector<16x8xf32>
    %cst_22 = arith.constant dense<0.000000e+00> : vector<16x8xf32>
    %67 = tpu.matmul %48, %16, %cst_22 {dimension_numbers = #tpu.dot_dimension_numbers<[1], [0], [0], [1], [0, 0, 1, 1], [], []>} : vector<16x16xf32>, vector<16x8xf32>, vector<16x8xf32> -> vector<16x8xf32>
    %68 = arith.addf %66, %67 : vector<16x8xf32>
    %cst_23 = arith.constant dense<0.000000e+00> : vector<16x8xf32>
    %69 = tpu.matmul %51, %17, %cst_23 {dimension_numbers = #tpu.dot_dimension_numbers<[1], [0], [0], [1], [0, 0, 1, 1], [], []>} : vector<16x16xf32>, vector<16x8xf32>, vector<16x8xf32> -> vector<16x8xf32>
    %70 = arith.addf %68, %69 : vector<16x8xf32>
    %71 = vector.broadcast %63 : vector<16x1xf32> to vector<16x8xf32>
    %72 = arith.mulf %70, %71 : vector<16x8xf32>
    "tpu.trace_start"() <{level = 10 : i32, message = "ac,bc->ab"}> : () -> ()
    %cst_24 = arith.constant dense<0.000000e+00> : vector<16x16xf32>
    %73 = tpu.matmul %7, %10, %cst_24 {dimension_numbers = #tpu.dot_dimension_numbers<[1], [1], [0], [0], [0, 0, 1, 0], [], []>} : vector<16x8xf32>, vector<16x8xf32>, vector<16x16xf32> -> vector<16x16xf32>
    "tpu.trace_stop"() : () -> ()
    %cst_25 = arith.constant 0.353553385 : f32
    %74 = vector.broadcast %cst_25 : f32 to vector<16x16xf32>
    %75 = arith.mulf %73, %74 : vector<16x16xf32>
    %76 = arith.addf %75, %18 : vector<16x16xf32>
    "tpu.trace_start"() <{level = 10 : i32, message = "ac,bc->ab"}> : () -> ()
    %cst_26 = arith.constant dense<0.000000e+00> : vector<16x16xf32>
    %77 = tpu.matmul %7, %11, %cst_26 {dimension_numbers = #tpu.dot_dimension_numbers<[1], [1], [0], [0], [0, 0, 1, 0], [], []>} : vector<16x8xf32>, vector<16x8xf32>, vector<16x16xf32> -> vector<16x16xf32>
    "tpu.trace_stop"() : () -> ()
    %cst_27 = arith.constant 0.353553385 : f32
    %78 = vector.broadcast %cst_27 : f32 to vector<16x16xf32>
    %79 = arith.mulf %77, %78 : vector<16x16xf32>
    %80 = arith.addf %79, %18 : vector<16x16xf32>
    "tpu.trace_start"() <{level = 10 : i32, message = "ac,bc->ab"}> : () -> ()
    %cst_28 = arith.constant dense<0.000000e+00> : vector<16x16xf32>
    %81 = tpu.matmul %7, %12, %cst_28 {dimension_numbers = #tpu.dot_dimension_numbers<[1], [1], [0], [0], [0, 0, 1, 0], [], []>} : vector<16x8xf32>, vector<16x8xf32>, vector<16x16xf32> -> vector<16x16xf32>
    "tpu.trace_stop"() : () -> ()
    %cst_29 = arith.constant 0.353553385 : f32
    %82 = vector.broadcast %cst_29 : f32 to vector<16x16xf32>
    %83 = arith.mulf %81, %82 : vector<16x16xf32>
    %84 = arith.addf %83, %18 : vector<16x16xf32>
    "tpu.trace_start"() <{level = 10 : i32, message = "ac,bc->ab"}> : () -> ()
    %cst_30 = arith.constant dense<0.000000e+00> : vector<16x16xf32>
    %85 = tpu.matmul %7, %13, %cst_30 {dimension_numbers = #tpu.dot_dimension_numbers<[1], [1], [0], [0], [0, 0, 1, 0], [], []>} : vector<16x8xf32>, vector<16x8xf32>, vector<16x16xf32> -> vector<16x16xf32>
    "tpu.trace_stop"() : () -> ()
    %cst_31 = arith.constant 0.353553385 : f32
    %86 = vector.broadcast %cst_31 : f32 to vector<16x16xf32>
    %87 = arith.mulf %85, %86 : vector<16x16xf32>
    %88 = arith.addf %87, %18 : vector<16x16xf32>
    %89 = arith.maximumf %76, %80 : vector<16x16xf32>
    %90 = arith.maximumf %89, %84 : vector<16x16xf32>
    %91 = arith.maximumf %90, %88 : vector<16x16xf32>
    %cst_32 = arith.constant dense<0xFF800000> : vector<16xf32>
    %92 = vector.multi_reduction <maximumf>, %91, %cst_32 [1] : vector<16x16xf32> to vector<16xf32>
    %93 = vector.shape_cast %92 : vector<16xf32> to vector<16x1xf32>
    %94 = vector.broadcast %93 : vector<16x1xf32> to vector<16x16xf32>
    %95 = arith.subf %76, %94 : vector<16x16xf32>
    %96 = math.exp %95 : vector<16x16xf32>
    %97 = vector.broadcast %93 : vector<16x1xf32> to vector<16x16xf32>
    %98 = arith.subf %80, %97 : vector<16x16xf32>
    %99 = math.exp %98 : vector<16x16xf32>
    %100 = vector.broadcast %93 : vector<16x1xf32> to vector<16x16xf32>
    %101 = arith.subf %84, %100 : vector<16x16xf32>
    %102 = math.exp %101 : vector<16x16xf32>
    %103 = vector.broadcast %93 : vector<16x1xf32> to vector<16x16xf32>
    %104 = arith.subf %88, %103 : vector<16x16xf32>
    %105 = math.exp %104 : vector<16x16xf32>
    %cst_33 = arith.constant dense<0.000000e+00> : vector<16xf32>
    %106 = vector.multi_reduction <add>, %96, %cst_33 [1] : vector<16x16xf32> to vector<16xf32>
    %107 = vector.shape_cast %106 : vector<16xf32> to vector<16x1xf32>
    %cst_34 = arith.constant dense<0.000000e+00> : vector<16xf32>
    %108 = vector.multi_reduction <add>, %99, %cst_34 [1] : vector<16x16xf32> to vector<16xf32>
    %109 = vector.shape_cast %108 : vector<16xf32> to vector<16x1xf32>
    %110 = arith.addf %107, %109 : vector<16x1xf32>
    %cst_35 = arith.constant dense<0.000000e+00> : vector<16xf32>
    %111 = vector.multi_reduction <add>, %102, %cst_35 [1] : vector<16x16xf32> to vector<16xf32>
    %112 = vector.shape_cast %111 : vector<16xf32> to vector<16x1xf32>
    %113 = arith.addf %110, %112 : vector<16x1xf32>
    %cst_36 = arith.constant dense<0.000000e+00> : vector<16xf32>
    %114 = vector.multi_reduction <add>, %105, %cst_36 [1] : vector<16x16xf32> to vector<16xf32>
    %115 = vector.shape_cast %114 : vector<16xf32> to vector<16x1xf32>
    %116 = arith.addf %113, %115 : vector<16x1xf32>
    %117 = tpu.reciprocal %116 : vector<16x1xf32> -> vector<16x1xf32>
    %cst_37 = arith.constant dense<0.000000e+00> : vector<16x8xf32>
    %118 = tpu.matmul %96, %14, %cst_37 {dimension_numbers = #tpu.dot_dimension_numbers<[1], [0], [0], [1], [0, 0, 1, 1], [], []>} : vector<16x16xf32>, vector<16x8xf32>, vector<16x8xf32> -> vector<16x8xf32>
    %cst_38 = arith.constant dense<0.000000e+00> : vector<16x8xf32>
    %119 = tpu.matmul %99, %15, %cst_38 {dimension_numbers = #tpu.dot_dimension_numbers<[1], [0], [0], [1], [0, 0, 1, 1], [], []>} : vector<16x16xf32>, vector<16x8xf32>, vector<16x8xf32> -> vector<16x8xf32>
    %120 = arith.addf %118, %119 : vector<16x8xf32>
    %cst_39 = arith.constant dense<0.000000e+00> : vector<16x8xf32>
    %121 = tpu.matmul %102, %16, %cst_39 {dimension_numbers = #tpu.dot_dimension_numbers<[1], [0], [0], [1], [0, 0, 1, 1], [], []>} : vector<16x16xf32>, vector<16x8xf32>, vector<16x8xf32> -> vector<16x8xf32>
    %122 = arith.addf %120, %121 : vector<16x8xf32>
    %cst_40 = arith.constant dense<0.000000e+00> : vector<16x8xf32>
    %123 = tpu.matmul %105, %17, %cst_40 {dimension_numbers = #tpu.dot_dimension_numbers<[1], [0], [0], [1], [0, 0, 1, 1], [], []>} : vector<16x16xf32>, vector<16x8xf32>, vector<16x8xf32> -> vector<16x8xf32>
    %124 = arith.addf %122, %123 : vector<16x8xf32>
    %125 = vector.broadcast %117 : vector<16x1xf32> to vector<16x8xf32>
    %126 = arith.mulf %124, %125 : vector<16x8xf32>
    "tpu.trace_start"() <{level = 10 : i32, message = "ac,bc->ab"}> : () -> ()
    %cst_41 = arith.constant dense<0.000000e+00> : vector<16x16xf32>
    %127 = tpu.matmul %8, %10, %cst_41 {dimension_numbers = #tpu.dot_dimension_numbers<[1], [1], [0], [0], [0, 0, 1, 0], [], []>} : vector<16x8xf32>, vector<16x8xf32>, vector<16x16xf32> -> vector<16x16xf32>
    "tpu.trace_stop"() : () -> ()
    %cst_42 = arith.constant 0.353553385 : f32
    %128 = vector.broadcast %cst_42 : f32 to vector<16x16xf32>
    %129 = arith.mulf %127, %128 : vector<16x16xf32>
    %130 = arith.addf %129, %18 : vector<16x16xf32>
    "tpu.trace_start"() <{level = 10 : i32, message = "ac,bc->ab"}> : () -> ()
    %cst_43 = arith.constant dense<0.000000e+00> : vector<16x16xf32>
    %131 = tpu.matmul %8, %11, %cst_43 {dimension_numbers = #tpu.dot_dimension_numbers<[1], [1], [0], [0], [0, 0, 1, 0], [], []>} : vector<16x8xf32>, vector<16x8xf32>, vector<16x16xf32> -> vector<16x16xf32>
    "tpu.trace_stop"() : () -> ()
    %cst_44 = arith.constant 0.353553385 : f32
    %132 = vector.broadcast %cst_44 : f32 to vector<16x16xf32>
    %133 = arith.mulf %131, %132 : vector<16x16xf32>
    %134 = arith.addf %133, %18 : vector<16x16xf32>
    "tpu.trace_start"() <{level = 10 : i32, message = "ac,bc->ab"}> : () -> ()
    %cst_45 = arith.constant dense<0.000000e+00> : vector<16x16xf32>
    %135 = tpu.matmul %8, %12, %cst_45 {dimension_numbers = #tpu.dot_dimension_numbers<[1], [1], [0], [0], [0, 0, 1, 0], [], []>} : vector<16x8xf32>, vector<16x8xf32>, vector<16x16xf32> -> vector<16x16xf32>
    "tpu.trace_stop"() : () -> ()
    %cst_46 = arith.constant 0.353553385 : f32
    %136 = vector.broadcast %cst_46 : f32 to vector<16x16xf32>
    %137 = arith.mulf %135, %136 : vector<16x16xf32>
    %138 = arith.addf %137, %18 : vector<16x16xf32>
    "tpu.trace_start"() <{level = 10 : i32, message = "ac,bc->ab"}> : () -> ()
    %cst_47 = arith.constant dense<0.000000e+00> : vector<16x16xf32>
    %139 = tpu.matmul %8, %13, %cst_47 {dimension_numbers = #tpu.dot_dimension_numbers<[1], [1], [0], [0], [0, 0, 1, 0], [], []>} : vector<16x8xf32>, vector<16x8xf32>, vector<16x16xf32> -> vector<16x16xf32>
    "tpu.trace_stop"() : () -> ()
    %cst_48 = arith.constant 0.353553385 : f32
    %140 = vector.broadcast %cst_48 : f32 to vector<16x16xf32>
    %141 = arith.mulf %139, %140 : vector<16x16xf32>
    %142 = arith.addf %141, %18 : vector<16x16xf32>
    %143 = arith.maximumf %130, %134 : vector<16x16xf32>
    %144 = arith.maximumf %143, %138 : vector<16x16xf32>
    %145 = arith.maximumf %144, %142 : vector<16x16xf32>
    %cst_49 = arith.constant dense<0xFF800000> : vector<16xf32>
    %146 = vector.multi_reduction <maximumf>, %145, %cst_49 [1] : vector<16x16xf32> to vector<16xf32>
    %147 = vector.shape_cast %146 : vector<16xf32> to vector<16x1xf32>
    %148 = vector.broadcast %147 : vector<16x1xf32> to vector<16x16xf32>
    %149 = arith.subf %130, %148 : vector<16x16xf32>
    %150 = math.exp %149 : vector<16x16xf32>
    %151 = vector.broadcast %147 : vector<16x1xf32> to vector<16x16xf32>
    %152 = arith.subf %134, %151 : vector<16x16xf32>
    %153 = math.exp %152 : vector<16x16xf32>
    %154 = vector.broadcast %147 : vector<16x1xf32> to vector<16x16xf32>
    %155 = arith.subf %138, %154 : vector<16x16xf32>
    %156 = math.exp %155 : vector<16x16xf32>
    %157 = vector.broadcast %147 : vector<16x1xf32> to vector<16x16xf32>
    %158 = arith.subf %142, %157 : vector<16x16xf32>
    %159 = math.exp %158 : vector<16x16xf32>
    %cst_50 = arith.constant dense<0.000000e+00> : vector<16xf32>
    %160 = vector.multi_reduction <add>, %150, %cst_50 [1] : vector<16x16xf32> to vector<16xf32>
    %161 = vector.shape_cast %160 : vector<16xf32> to vector<16x1xf32>
    %cst_51 = arith.constant dense<0.000000e+00> : vector<16xf32>
    %162 = vector.multi_reduction <add>, %153, %cst_51 [1] : vector<16x16xf32> to vector<16xf32>
    %163 = vector.shape_cast %162 : vector<16xf32> to vector<16x1xf32>
    %164 = arith.addf %161, %163 : vector<16x1xf32>
    %cst_52 = arith.constant dense<0.000000e+00> : vector<16xf32>
    %165 = vector.multi_reduction <add>, %156, %cst_52 [1] : vector<16x16xf32> to vector<16xf32>
    %166 = vector.shape_cast %165 : vector<16xf32> to vector<16x1xf32>
    %167 = arith.addf %164, %166 : vector<16x1xf32>
    %cst_53 = arith.constant dense<0.000000e+00> : vector<16xf32>
    %168 = vector.multi_reduction <add>, %159, %cst_53 [1] : vector<16x16xf32> to vector<16xf32>
    %169 = vector.shape_cast %168 : vector<16xf32> to vector<16x1xf32>
    %170 = arith.addf %167, %169 : vector<16x1xf32>
    %171 = tpu.reciprocal %170 : vector<16x1xf32> -> vector<16x1xf32>
    %cst_54 = arith.constant dense<0.000000e+00> : vector<16x8xf32>
    %172 = tpu.matmul %150, %14, %cst_54 {dimension_numbers = #tpu.dot_dimension_numbers<[1], [0], [0], [1], [0, 0, 1, 1], [], []>} : vector<16x16xf32>, vector<16x8xf32>, vector<16x8xf32> -> vector<16x8xf32>
    %cst_55 = arith.constant dense<0.000000e+00> : vector<16x8xf32>
    %173 = tpu.matmul %153, %15, %cst_55 {dimension_numbers = #tpu.dot_dimension_numbers<[1], [0], [0], [1], [0, 0, 1, 1], [], []>} : vector<16x16xf32>, vector<16x8xf32>, vector<16x8xf32> -> vector<16x8xf32>
    %174 = arith.addf %172, %173 : vector<16x8xf32>
    %cst_56 = arith.constant dense<0.000000e+00> : vector<16x8xf32>
    %175 = tpu.matmul %156, %16, %cst_56 {dimension_numbers = #tpu.dot_dimension_numbers<[1], [0], [0], [1], [0, 0, 1, 1], [], []>} : vector<16x16xf32>, vector<16x8xf32>, vector<16x8xf32> -> vector<16x8xf32>
    %176 = arith.addf %174, %175 : vector<16x8xf32>
    %cst_57 = arith.constant dense<0.000000e+00> : vector<16x8xf32>
    %177 = tpu.matmul %159, %17, %cst_57 {dimension_numbers = #tpu.dot_dimension_numbers<[1], [0], [0], [1], [0, 0, 1, 1], [], []>} : vector<16x16xf32>, vector<16x8xf32>, vector<16x8xf32> -> vector<16x8xf32>
    %178 = arith.addf %176, %177 : vector<16x8xf32>
    %179 = vector.broadcast %171 : vector<16x1xf32> to vector<16x8xf32>
    %180 = arith.mulf %178, %179 : vector<16x8xf32>
    "tpu.trace_start"() <{level = 10 : i32, message = "ac,bc->ab"}> : () -> ()
    %cst_58 = arith.constant dense<0.000000e+00> : vector<16x16xf32>
    %181 = tpu.matmul %9, %10, %cst_58 {dimension_numbers = #tpu.dot_dimension_numbers<[1], [1], [0], [0], [0, 0, 1, 0], [], []>} : vector<16x8xf32>, vector<16x8xf32>, vector<16x16xf32> -> vector<16x16xf32>
    "tpu.trace_stop"() : () -> ()
    %cst_59 = arith.constant 0.353553385 : f32
    %182 = vector.broadcast %cst_59 : f32 to vector<16x16xf32>
    %183 = arith.mulf %181, %182 : vector<16x16xf32>
    %184 = arith.addf %183, %18 : vector<16x16xf32>
    "tpu.trace_start"() <{level = 10 : i32, message = "ac,bc->ab"}> : () -> ()
    %cst_60 = arith.constant dense<0.000000e+00> : vector<16x16xf32>
    %185 = tpu.matmul %9, %11, %cst_60 {dimension_numbers = #tpu.dot_dimension_numbers<[1], [1], [0], [0], [0, 0, 1, 0], [], []>} : vector<16x8xf32>, vector<16x8xf32>, vector<16x16xf32> -> vector<16x16xf32>
    "tpu.trace_stop"() : () -> ()
    %cst_61 = arith.constant 0.353553385 : f32
    %186 = vector.broadcast %cst_61 : f32 to vector<16x16xf32>
    %187 = arith.mulf %185, %186 : vector<16x16xf32>
    %188 = arith.addf %187, %18 : vector<16x16xf32>
    "tpu.trace_start"() <{level = 10 : i32, message = "ac,bc->ab"}> : () -> ()
    %cst_62 = arith.constant dense<0.000000e+00> : vector<16x16xf32>
    %189 = tpu.matmul %9, %12, %cst_62 {dimension_numbers = #tpu.dot_dimension_numbers<[1], [1], [0], [0], [0, 0, 1, 0], [], []>} : vector<16x8xf32>, vector<16x8xf32>, vector<16x16xf32> -> vector<16x16xf32>
    "tpu.trace_stop"() : () -> ()
    %cst_63 = arith.constant 0.353553385 : f32
    %190 = vector.broadcast %cst_63 : f32 to vector<16x16xf32>
    %191 = arith.mulf %189, %190 : vector<16x16xf32>
    %192 = arith.addf %191, %18 : vector<16x16xf32>
    "tpu.trace_start"() <{level = 10 : i32, message = "ac,bc->ab"}> : () -> ()
    %cst_64 = arith.constant dense<0.000000e+00> : vector<16x16xf32>
    %193 = tpu.matmul %9, %13, %cst_64 {dimension_numbers = #tpu.dot_dimension_numbers<[1], [1], [0], [0], [0, 0, 1, 0], [], []>} : vector<16x8xf32>, vector<16x8xf32>, vector<16x16xf32> -> vector<16x16xf32>
    "tpu.trace_stop"() : () -> ()
    %cst_65 = arith.constant 0.353553385 : f32
    %194 = vector.broadcast %cst_65 : f32 to vector<16x16xf32>
    %195 = arith.mulf %193, %194 : vector<16x16xf32>
    %196 = arith.addf %195, %18 : vector<16x16xf32>
    %197 = arith.maximumf %184, %188 : vector<16x16xf32>
    %198 = arith.maximumf %197, %192 : vector<16x16xf32>
    %199 = arith.maximumf %198, %196 : vector<16x16xf32>
    %cst_66 = arith.constant dense<0xFF800000> : vector<16xf32>
    %200 = vector.multi_reduction <maximumf>, %199, %cst_66 [1] : vector<16x16xf32> to vector<16xf32>
    %201 = vector.shape_cast %200 : vector<16xf32> to vector<16x1xf32>
    %202 = vector.broadcast %201 : vector<16x1xf32> to vector<16x16xf32>
    %203 = arith.subf %184, %202 : vector<16x16xf32>
    %204 = math.exp %203 : vector<16x16xf32>
    %205 = vector.broadcast %201 : vector<16x1xf32> to vector<16x16xf32>
    %206 = arith.subf %188, %205 : vector<16x16xf32>
    %207 = math.exp %206 : vector<16x16xf32>
    %208 = vector.broadcast %201 : vector<16x1xf32> to vector<16x16xf32>
    %209 = arith.subf %192, %208 : vector<16x16xf32>
    %210 = math.exp %209 : vector<16x16xf32>
    %211 = vector.broadcast %201 : vector<16x1xf32> to vector<16x16xf32>
    %212 = arith.subf %196, %211 : vector<16x16xf32>
    %213 = math.exp %212 : vector<16x16xf32>
    %cst_67 = arith.constant dense<0.000000e+00> : vector<16xf32>
    %214 = vector.multi_reduction <add>, %204, %cst_67 [1] : vector<16x16xf32> to vector<16xf32>
    %215 = vector.shape_cast %214 : vector<16xf32> to vector<16x1xf32>
    %cst_68 = arith.constant dense<0.000000e+00> : vector<16xf32>
    %216 = vector.multi_reduction <add>, %207, %cst_68 [1] : vector<16x16xf32> to vector<16xf32>
    %217 = vector.shape_cast %216 : vector<16xf32> to vector<16x1xf32>
    %218 = arith.addf %215, %217 : vector<16x1xf32>
    %cst_69 = arith.constant dense<0.000000e+00> : vector<16xf32>
    %219 = vector.multi_reduction <add>, %210, %cst_69 [1] : vector<16x16xf32> to vector<16xf32>
    %220 = vector.shape_cast %219 : vector<16xf32> to vector<16x1xf32>
    %221 = arith.addf %218, %220 : vector<16x1xf32>
    %cst_70 = arith.constant dense<0.000000e+00> : vector<16xf32>
    %222 = vector.multi_reduction <add>, %213, %cst_70 [1] : vector<16x16xf32> to vector<16xf32>
    %223 = vector.shape_cast %222 : vector<16xf32> to vector<16x1xf32>
    %224 = arith.addf %221, %223 : vector<16x1xf32>
    %225 = tpu.reciprocal %224 : vector<16x1xf32> -> vector<16x1xf32>
    %cst_71 = arith.constant dense<0.000000e+00> : vector<16x8xf32>
    %226 = tpu.matmul %204, %14, %cst_71 {dimension_numbers = #tpu.dot_dimension_numbers<[1], [0], [0], [1], [0, 0, 1, 1], [], []>} : vector<16x16xf32>, vector<16x8xf32>, vector<16x8xf32> -> vector<16x8xf32>
    %cst_72 = arith.constant dense<0.000000e+00> : vector<16x8xf32>
    %227 = tpu.matmul %207, %15, %cst_72 {dimension_numbers = #tpu.dot_dimension_numbers<[1], [0], [0], [1], [0, 0, 1, 1], [], []>} : vector<16x16xf32>, vector<16x8xf32>, vector<16x8xf32> -> vector<16x8xf32>
    %228 = arith.addf %226, %227 : vector<16x8xf32>
    %cst_73 = arith.constant dense<0.000000e+00> : vector<16x8xf32>
    %229 = tpu.matmul %210, %16, %cst_73 {dimension_numbers = #tpu.dot_dimension_numbers<[1], [0], [0], [1], [0, 0, 1, 1], [], []>} : vector<16x16xf32>, vector<16x8xf32>, vector<16x8xf32> -> vector<16x8xf32>
    %230 = arith.addf %228, %229 : vector<16x8xf32>
    %cst_74 = arith.constant dense<0.000000e+00> : vector<16x8xf32>
    %231 = tpu.matmul %213, %17, %cst_74 {dimension_numbers = #tpu.dot_dimension_numbers<[1], [0], [0], [1], [0, 0, 1, 1], [], []>} : vector<16x16xf32>, vector<16x8xf32>, vector<16x8xf32> -> vector<16x8xf32>
    %232 = arith.addf %230, %231 : vector<16x8xf32>
    %233 = vector.broadcast %225 : vector<16x1xf32> to vector<16x8xf32>
    %234 = arith.mulf %232, %233 : vector<16x8xf32>
    %c0_75 = arith.constant 0 : index
    %c0_76 = arith.constant 0 : index
    %235 = vector.load %arg4[%c0_75, %c0_76] : memref<32x32xf32, #tpu.memory_space<vmem>>, vector<32x32xf32>
    %c0_77 = arith.constant 0 : index
    %c0_78 = arith.constant 0 : index
    %236 = vector.load %arg5[%c0_77, %c0_78] : memref<1x32xf32, #tpu.memory_space<vmem>>, vector<1x32xf32>
    %237 = vector.broadcast %236 : vector<1x32xf32> to vector<16x32xf32>
    %238 = arith.addf %0, %237 : vector<16x32xf32>
    %239 = vector.extract_strided_slice %235 {offsets = [0, 0], sizes = [8, 32], strides = [1, 1]} : vector<32x32xf32> to vector<8x32xf32>
    %cst_79 = arith.constant dense<0.000000e+00> : vector<16x32xf32>
    %240 = tpu.matmul %72, %239, %cst_79 {dimension_numbers = #tpu.dot_dimension_numbers<[1], [0], [0], [1], [0, 0, 1, 1], [], []>} : vector<16x8xf32>, vector<8x32xf32>, vector<16x32xf32> -> vector<16x32xf32>
    %241 = arith.addf %238, %240 : vector<16x32xf32>
    %242 = vector.extract_strided_slice %235 {offsets = [8, 0], sizes = [8, 32], strides = [1, 1]} : vector<32x32xf32> to vector<8x32xf32>
    %cst_80 = arith.constant dense<0.000000e+00> : vector<16x32xf32>
    %243 = tpu.matmul %126, %242, %cst_80 {dimension_numbers = #tpu.dot_dimension_numbers<[1], [0], [0], [1], [0, 0, 1, 1], [], []>} : vector<16x8xf32>, vector<8x32xf32>, vector<16x32xf32> -> vector<16x32xf32>
    %244 = arith.addf %241, %243 : vector<16x32xf32>
    %245 = vector.extract_strided_slice %235 {offsets = [16, 0], sizes = [8, 32], strides = [1, 1]} : vector<32x32xf32> to vector<8x32xf32>
    %cst_81 = arith.constant dense<0.000000e+00> : vector<16x32xf32>
    %246 = tpu.matmul %180, %245, %cst_81 {dimension_numbers = #tpu.dot_dimension_numbers<[1], [0], [0], [1], [0, 0, 1, 1], [], []>} : vector<16x8xf32>, vector<8x32xf32>, vector<16x32xf32> -> vector<16x32xf32>
    %247 = arith.addf %244, %246 : vector<16x32xf32>
    %248 = vector.extract_strided_slice %235 {offsets = [24, 0], sizes = [8, 32], strides = [1, 1]} : vector<32x32xf32> to vector<8x32xf32>
    %cst_82 = arith.constant dense<0.000000e+00> : vector<16x32xf32>
    %249 = tpu.matmul %234, %248, %cst_82 {dimension_numbers = #tpu.dot_dimension_numbers<[1], [0], [0], [1], [0, 0, 1, 1], [], []>} : vector<16x8xf32>, vector<8x32xf32>, vector<16x32xf32> -> vector<16x32xf32>
    %250 = arith.addf %247, %249 : vector<16x32xf32>
    %cst_83 = arith.constant dense<0.000000e+00> : vector<16xf32>
    %251 = vector.multi_reduction <add>, %250, %cst_83 [1] : vector<16x32xf32> to vector<16xf32>
    %252 = vector.shape_cast %251 : vector<16xf32> to vector<16x1xf32>
    %cst_84 = arith.constant 3.200000e+01 : f32
    %253 = vector.broadcast %cst_84 : f32 to vector<16x1xf32>
    %254 = arith.divf %252, %253 : vector<16x1xf32>
    %255 = vector.broadcast %254 : vector<16x1xf32> to vector<16x32xf32>
    %256 = arith.subf %250, %255 : vector<16x32xf32>
    %257 = arith.mulf %256, %256 : vector<16x32xf32>
    %cst_85 = arith.constant dense<0.000000e+00> : vector<16xf32>
    %258 = vector.multi_reduction <add>, %257, %cst_85 [1] : vector<16x32xf32> to vector<16xf32>
    %259 = vector.shape_cast %258 : vector<16xf32> to vector<16x1xf32>
    %cst_86 = arith.constant 3.200000e+01 : f32
    %260 = vector.broadcast %cst_86 : f32 to vector<16x1xf32>
    %261 = arith.divf %259, %260 : vector<16x1xf32>
    %262 = vector.broadcast %254 : vector<16x1xf32> to vector<16x32xf32>
    %263 = arith.subf %250, %262 : vector<16x32xf32>
    %cst_87 = arith.constant 9.99999974E-6 : f32
    %264 = vector.broadcast %cst_87 : f32 to vector<16x1xf32>
    %265 = arith.addf %261, %264 : vector<16x1xf32>
    %266 = math.rsqrt %265 : vector<16x1xf32>
    %267 = vector.broadcast %266 : vector<16x1xf32> to vector<16x32xf32>
    %268 = arith.mulf %263, %267 : vector<16x32xf32>
    %c0_88 = arith.constant 0 : index
    %c0_89 = arith.constant 0 : index
    %269 = vector.load %arg6[%c0_88, %c0_89] : memref<1x32xf32, #tpu.memory_space<vmem>>, vector<1x32xf32>
    %270 = vector.broadcast %269 : vector<1x32xf32> to vector<16x32xf32>
    %271 = arith.mulf %268, %270 : vector<16x32xf32>
    %c0_90 = arith.constant 0 : index
    %c0_91 = arith.constant 0 : index
    %272 = vector.load %arg7[%c0_90, %c0_91] : memref<1x32xf32, #tpu.memory_space<vmem>>, vector<1x32xf32>
    %273 = vector.broadcast %272 : vector<1x32xf32> to vector<16x32xf32>
    %274 = arith.addf %271, %273 : vector<16x32xf32>
    %c0_92 = arith.constant 0 : index
    %c0_93 = arith.constant 0 : index
    %275 = vector.load %arg8[%c0_92, %c0_93] : memref<16x32xf32, #tpu.memory_space<vmem>>, vector<16x32xf32>
    tpu.vector_store %arg8[%c0_92, %c0_93], %274 {strides = array<i32>} : memref<16x32xf32, #tpu.memory_space<vmem>>, vector<16x32xf32>,
    return
  }
}

</mosaic_0001>

<bundles_post_ra>
// kernel: multi_head_attention.1
= control target key start
LH: loop header
LB: loop body
LE: loop exit
PB: predicated region body
PF: predicated region fallthrough
CT: control target
= control target key end

     0   :  { %13 = vsyncpa [#allocation3], 0  ;;  %s2717_s0 = inlined_call_operand.hbm [shape: f32[16,32], index: 0, kind: input, shape index: {}]   ;;  %s2718_s1 = inlined_call_operand.hbm [shape: f32[16,16], index: 1, kind: input, shape index: {}]   ;;  %s2719_s2 = inlined_call_operand.hbm [shape: f32[32,96], index: 2, kind: input, shape index: {}]   ;;  %s2720_s3 = inlined_call_operand.vmem [shape: f32[1,96], index: 3, kind: input, shape index: {}]   ;;  %s2721_s4 = inlined_call_operand.hbm [shape: f32[32,32], index: 4, kind: input, shape index: {}]   ;;  %s2722_s5 = inlined_call_operand.hbm [shape: f32[1,32], index: 5, kind: input, shape index: {}]   ;;  %s2723_s6 = inlined_call_operand.vmem [shape: f32[1,32], index: 6, kind: input, shape index: {}]   ;;  %s2724_s7 = inlined_call_operand.vmem [shape: f32[1,32], index: 7, kind: input, shape index: {}]   ;;  %s2725_s8 = inlined_call_operand.hbm [shape: f32[16,32], index: 8, kind: output, shape index: {}]  }
   0x1   :  { %14 = vsyncpa [#allocation6], 0 }
   0x2   :  { %15 = vsyncpa [#allocation9], 0 }
   0x3   :  { %16 = vsyncpa [#allocation4], 0  ;;  %s34_s29 = sshll.u32 %s2718_s1, 4  ;;  %s2146_s30 = smov [#allocation5]   ;;  %s35_s29 = int_to_ptr.hbm [resolvable:$true] %s34_s29 }
   0x4   :  { %s36_s9 = sshll.u32 %s2146_s30, 4  ;;  %s62_s12 = sshll.u32 %s2721_s4, 4  ;;  %s37_s9 = int_to_ptr.vmem [resolvable:$true] %s36_s9  ;;  %s63_s12 = int_to_ptr.hbm [resolvable:$true] %s62_s12 }
   0x5   :  { %s2147_s13 = smov 128   ;;  %s2148_s14 = smov 8  }
   0x6   :  { %42 = dma.hbm_to_vmem [thread:$0]  %s35_s29, 256, %s37_s9, [#allocation6], %s2147_s13, %s2147_s13, %s2148_s14  }
   0x7   :  { %s2149_s15 = smov [#allocation8]   ;;  %s21_s1 = sshll.u32 %s2717_s0, 4  ;;  %s22_s1 = int_to_ptr.hbm [resolvable:$true] %s21_s1 }
   0x8   :  { %s64_s16 = sshll.u32 %s2149_s15, 4  ;;  %s47_s20 = sshll.u32 %s2719_s2, 4  ;;  %s65_s16 = int_to_ptr.vmem [resolvable:$true] %s64_s16  ;;  %s48_s20 = int_to_ptr.hbm [resolvable:$true] %s47_s20 }
   0x9   :  { %70 = dma.hbm_to_vmem [thread:$0]  %s63_s12, 512, %s65_s16, [#allocation9], %s2147_s13, %s2147_s13, %s2148_s14  }
   0xa   :  { %s2150_s21 = smov [#allocation2]   ;;  %s2151_s23 = smov [#allocation7]  }
   0xb   :  { %s23_s22 = sshll.u32 %s2150_s21, 4  ;;  %s49_s0 = sshll.u32 %s2151_s23, 4  ;;  %s24_s22 = int_to_ptr.vmem [resolvable:$true] %s23_s22  ;;  %s50_s0 = int_to_ptr.vmem [resolvable:$true] %s49_s0 }
   0xc   :  { %29 = dma.hbm_to_vmem [thread:$0]  %s22_s1, 256, %s24_s22, [#allocation3], %s2147_s13, %s2147_s13, %s2148_s14  }
   0xd   :  { %s76_s26 = sshll.u32 %s2722_s5, 4  ;;  %s2152_s2 = smov [#allocation10]   ;;  %s77_s26 = int_to_ptr.hbm [resolvable:$true] %s76_s26 }
   0xe   :  { %55 = dma.hbm_to_vmem [thread:$0]  %s48_s20, 512, %s50_s0, [#allocation6], %s2147_s13, %s2147_s13, %s2148_s14  }
   0xf   :  { %s78_s27 = sshll.u32 %s2152_s2, 4  ;;  %s79_s27 = int_to_ptr.vmem [resolvable:$true] %s78_s27 }
  0x10   :  { %81 = dma.hbm_to_vmem [thread:$0]  %s77_s26, 16, %s79_s27, [#allocation9]  }
  0x11   :  { %2138 = dma.done.wait [#allocation3], 256  }
  0x12   :  { %2139 = vsyncadd [#allocation3], 4294967040 }
  0x13   :  { %2140 = dma.done.wait [#allocation6], 768  }
  0x14   :  { %2141 = vsyncadd [#allocation6], 4294966528 }
  0x15   :  { %2142 = dma.done.wait [#allocation9], 528  }
  0x16   :  { %2143 = vsyncadd [#allocation9], 4294966768  ;;  %v111_v0 = vld [vmem:[#allocation7 + $0x18] sm:$0xff]  ;;  %v110_v1 = vld [vmem:[#allocation7 + $0x10] sm:$0xff]  ;;  %vm116_vm0 = vcmask 261120   ;;  %s2153_s29 = smov 88  }
  0x17   :  { %135 = vmatpush.msra.mxu0 %v111_v0  ;;  %1858 = vmatpush.msra.mxu1 %v111_v0  ;;  %v109_v2 = vld [vmem:[#allocation7 + $0x8] sm:$0xff]  ;;  %v108_v3 = vld [vmem:[#allocation7] sm:$0xff]  ;;  %s2154_s30 = smov 80   ;;  %s2155_s9 = smov 96   ;;  %vm154_vm1 = vcmask 64512   ;;  %v2347_v36 = vld [vmem:[#allocation5] sm:$0xff] }
  0x18   :  { %v106_v4 = vld [vmem:[#allocation2] sm:$0xff]  ;;  %v107_v5 = vld [vmem:[#allocation2 + $0x8] sm:$0xff]  ;;  %s2157_s10 = smov 64   ;;  %s2158_s11 = smov 48   ;;  %v2353_v51 = vld [vmem:[#allocation5 + $0x8] sm:$0xff]  ;;  %vm301_vm2 = vcmask 130048  }
  0x19   :  { %136 = vmatpush.msra.mxu0 %v110_v1  ;;  %1859 = vmatpush.msra.mxu1 %v110_v1  ;;  %v1902_v6 = vld [vmem:[%s2720_s3] ss:$0 sm:$0xff]  ;;  %s2156_s3 = smov 72   ;;  %s2159_s12 = smov 56  }
  0x1a   :  { %s2160_s15 = smov 40   ;;  %s2161_s16 = smov 120  }
  0x1b   :  { %137 = vmatpush.msra.mxu0 %v109_v2  ;;  %1860 = vmatpush.msra.mxu1 %v109_v2  ;;  %s2162_s17 = smov 112   ;;  %s2163_s18 = smov 104  }
  0x1d   :  { %138 = vmatpush.msra.mxu0 %v108_v3  ;;  %1861 = vmatpush.msra.mxu1 %v108_v3 }
  0x1e   :  { %1752 = vmatmul.msk.f32.vlgmr.msra.gmra.mxu0 %vm116_vm0, %v106_v4  ;;  %1753 = vmatmul.msk.f32.vlgmr.msra.gmra.mxu1 %vm116_vm0, %v107_v5 }
  0x9b   :  { %v140_v7 = vpop.f32.mrf.mxu0  ;;  %v143_v8 = vpop.f32.mrf.mxu1 }
  0x9c   :  { %v2243_v9 = vadd.f32 %v1902_v6, %v140_v7  ;;  %v2245_v10 = vadd.f32 %v1902_v6, %v143_v8 }
  0x9e   :  { %192 = vrot.lane.b32.xlu0 %v2245_v10, %s2153_s29  ;;  %225 = vrot.lane.b32.xlu2 %v2243_v9, %s2154_s30  ;;  %v1882_v11 = vpack.i.bf16 %v2243_v9, %v2245_v10 }
  0x9f   :  { %190 = vrot.lane.b32.xlu1 %v2243_v9, %s2153_s29 }
  0xa6   :  { %227 = vrot.lane.b32.xlu0 %v2245_v10, %s2154_s30  ;;  %150 = vrot.lane.b32.xlu2 %v2243_v9, %s2155_s9 }
  0xa7   :  { %152 = vrot.lane.b32.xlu1 %v2245_v10, %s2155_s9 }
  0xae   :  { %262 = vrot.lane.b32.xlu0 %v2245_v10, %s2156_s3 }
  0xaf   :  { %260 = vrot.lane.b32.xlu1 %v2243_v9, %s2156_s3 }
  0xb7   :  { %1883 = vrot.lane.b32.xlu1 %v1882_v11, %s2157_s10 }
  0xbf   :  { %1888 = vrot.lane.b32.xlu1 %v1882_v11, %s2158_s11 }
  0xc7   :  { %1893 = vrot.lane.b32.xlu1 %v1882_v11, %s2159_s12 }
  0xcf   :  { %1898 = vrot.lane.b32.xlu1 %v1882_v11, %s2160_s15 }
  0xd7   :  { %536 = vrot.lane.b32.xlu1 %v2243_v9, %s2161_s16 }
  0xf8   :  { %v2265_v14 = vpop.permute.xlu2 %225 }
 0x100   :  { %v2279_v17 = vpop.permute.xlu2 %150 }
 0x110   :  { %v2259_v12 = vpop.permute.xlu0 %192 }
 0x111   :  { %v2261_v13 = vpop.permute.xlu1 %190  ;;  %1758 = vmatpush.xpose.msk.msra.mxu2 %vm154_vm1, %v2259_v12 }
 0x115   :  { %1759 = vmatpush.xpose.msk.msra.mxu2 %vm154_vm1, %v2261_v13 }
 0x118   :  { %v2269_v15 = vpop.permute.xlu0 %227  ;;  %1760 = vmatmul.msk.f32.vlgmr.msra.gmra.mxu2 %vm154_vm1, %v2243_v9 }
 0x119   :  { %v2273_v16 = vpop.permute.xlu1 %152  ;;  %1762 = vmatpush.xpose.msk.msra.mxu3 %vm154_vm1, %v2269_v15 }
 0x11a   :  { %1754 = vmatpush.xpose.msk.msrb.mxu1 %vm154_vm1, %v2273_v16 }
 0x11d   :  { %1763 = vmatpush.xpose.msk.msra.mxu3 %vm154_vm1, %v2265_v14 }
 0x11e   :  { %1755 = vmatpush.xpose.msk.msrb.mxu1 %vm154_vm1, %v2279_v17 }
 0x120   :  { %v2285_v18 = vpop.permute.xlu0 %262  ;;  %1761 = vmatmul.msk.f32.gmra.mxu2 %vm154_vm1, %v2245_v10  ;;  %1764 = vmatmul.msk.f32.vlgmr.msra.gmra.mxu3 %vm154_vm1, %v2243_v9 }
 0x121   :  { %1756 = vmatmul.msk.f32.vlgmr.msrb.gmra.mxu1 %vm154_vm1, %v2243_v9  ;;  %v2293_v19 = vpop.permute.xlu1 %260  ;;  %1766 = vmatpush.xpose.msk.msrb.mxu0 %vm154_vm1, %v2285_v18 }
 0x125   :  { %1767 = vmatpush.xpose.msk.msrb.mxu0 %vm154_vm1, %v2293_v19 }
 0x128   :  { %1765 = vmatmul.msk.f32.gmra.mxu3 %vm154_vm1, %v2245_v10  ;;  %1768 = vmatmul.msk.f32.vlgmr.msrb.gmra.mxu0 %vm154_vm1, %v2243_v9 }
 0x129   :  { %1757 = vmatmul.msk.f32.gmra.mxu1 %vm154_vm1, %v2245_v10  ;;  %v1884_v20 = vpop.permute.xlu1 %1883 }
 0x12a   :  { %v2305_v21 = vunpack.i.l.bf16 %v1884_v20  ;;  %v2307_v22 = vunpack.i.h.bf16 %v1884_v20 }
 0x12c   :  { %451 = vmatpush.msrb.mxu2 %v2305_v21 }
 0x12e   :  { %452 = vmatpush.msrb.mxu2 %v2307_v22 }
 0x130   :  { %1782 = vmatpush.xpose.msk.msra.mxu2 %vm154_vm1, %v2259_v12  ;;  %1769 = vmatmul.msk.f32.gmra.mxu0 %vm154_vm1, %v2245_v10 }
 0x131   :  { %v1889_v23 = vpop.permute.xlu1 %1888 }
 0x132   :  { %v2315_v24 = vunpack.i.l.bf16 %v1889_v23  ;;  %v2319_v25 = vunpack.i.h.bf16 %v1889_v23 }
 0x134   :  { %1783 = vmatpush.xpose.msk.msra.mxu2 %vm154_vm1, %v2261_v13  ;;  %486 = vmatpush.msrb.mxu3 %v2315_v24 }
 0x136   :  { %487 = vmatpush.msrb.mxu3 %v2319_v25 }
 0x138   :  { %1786 = vmatpush.xpose.msk.msra.mxu3 %vm154_vm1, %v2269_v15 }
 0x139   :  { %v1894_v26 = vpop.permute.xlu1 %1893 }
 0x13a   :  { %v2325_v27 = vunpack.i.l.bf16 %v1894_v26  ;;  %v2329_v28 = vunpack.i.h.bf16 %v1894_v26 }
 0x13c   :  { %1787 = vmatpush.xpose.msk.msra.mxu3 %vm154_vm1, %v2265_v14  ;;  %416 = vmatpush.msra.mxu1 %v2325_v27 }
 0x13e   :  { %417 = vmatpush.msra.mxu1 %v2329_v28 }
 0x140   :  { %1778 = vmatpush.xpose.msk.msrb.mxu1 %vm154_vm1, %v2273_v16 }
 0x141   :  { %v1899_v29 = vpop.permute.xlu1 %1898 }
 0x142   :  { %v2335_v30 = vunpack.i.l.bf16 %v1899_v29  ;;  %v2339_v31 = vunpack.i.h.bf16 %v1899_v29 }
 0x144   :  { %1779 = vmatpush.xpose.msk.msrb.mxu1 %vm154_vm1, %v2279_v17  ;;  %523 = vmatpush.msra.mxu0 %v2335_v30 }
 0x146   :  { %524 = vmatpush.msra.mxu0 %v2339_v31 }
 0x148   :  { %1790 = vmatpush.xpose.msk.msrb.mxu0 %vm154_vm1, %v2285_v18 }
 0x14c   :  { %1791 = vmatpush.xpose.msk.msrb.mxu0 %vm154_vm1, %v2293_v19 }
 0x19b   :  { %v215_v32 = vpop.f32.mrf.mxu2 }
 0x19c   :  { %v221_v35 = vmul.f32 0.35355338, %v215_v32 }
 0x19e   :  { %v180_v33 = vpop.f32.mrf.mxu1  ;;  %v223_v39 = vadd.f32 %v221_v35, %v2347_v36 }
 0x19f   :  { %v186_v34 = vmul.f32 0.35355338, %v180_v33 }
 0x1a1   :  { %v188_v37 = vadd.f32 %v186_v34, %v2347_v36 }
 0x1a3   :  { %v250_v38 = vpop.f32.mrf.mxu3  ;;  %v218_v41 = vpop.f32.mrf.mxu2  ;;  %v295_v43 = vmax.f32 %v188_v37, %v223_v39 }
 0x1a4   :  { %v256_v40 = vmul.f32 0.35355338, %v250_v38  ;;  %v222_v48 = vmul.f32 0.35355338, %v218_v41 }
 0x1a5   :  { %v285_v42 = vpop.f32.mrf.mxu0 }
 0x1a6   :  { %v258_v44 = vadd.f32 %v256_v40, %v2347_v36  ;;  %v183_v45 = vpop.f32.mrf.mxu1  ;;  %v291_v46 = vmul.f32 0.35355338, %v285_v42  ;;  %v224_v55 = vadd.f32 %v222_v48, %v2353_v51 }
 0x1a7   :  { %v187_v47 = vmul.f32 0.35355338, %v183_v45 }
 0x1a8   :  { %v293_v49 = vadd.f32 %v291_v46, %v2347_v36  ;;  %v297_v50 = vmax.f32 %v295_v43, %v258_v44 }
 0x1a9   :  { %v189_v52 = vadd.f32 %v187_v47, %v2353_v51  ;;  %v537_v47 = vpop.permute.xlu1 %536 }
 0x1aa   :  { %v299_v53 = vmax.f32 %v297_v50, %v293_v49 }
 0x1ab   :  { %v253_v54 = vpop.f32.mrf.mxu3  ;;  %v296_v59 = vmax.f32 %v189_v52, %v224_v55 }
 0x1ac   :  { %v257_v56 = vmul.f32 0.35355338, %v253_v54  ;;  %v302_v57 = vsel %vm301_vm2, %v299_v53, -inf }
 0x1ad   :  { %303 = vmax.xlane.f32.xlu2 %v302_v57  ;;  %v288_v58 = vpop.f32.mrf.mxu0 }
 0x1ae   :  { %v259_v60 = vadd.f32 %v257_v56, %v2353_v51  ;;  %v292_v61 = vmul.f32 0.35355338, %v288_v58 }
 0x1b0   :  { %v294_v62 = vadd.f32 %v292_v61, %v2353_v51  ;;  %v298_v63 = vmax.f32 %v296_v59, %v259_v60 }
 0x1b2   :  { %v300_v0 = vmax.f32 %v298_v63, %v294_v62 }
 0x1b4   :  { %v305_v1 = vsel %vm301_vm2, %v300_v0, -inf }
 0x1b5   :  { %306 = vmax.xlane.f32.xlu0 %v305_v1 }
 0x1c5   :  { %538 = vrot.lane.b32.xlu2 %v2245_v10, %s2161_s16 }
 0x1cd   :  { %870 = vrot.lane.b32.xlu2 %v2245_v10, %s2162_s17 }
 0x220   :  { %v304_v2 = vpop.xlane.xlu2 %303 }
 0x221   :  { %v308_v3 = vsub.f32 %v188_v37, %v304_v2  ;;  %v314_v4 = vsub.f32 %v223_v39, %v304_v2  ;;  %v320_v5 = vsub.f32 %v258_v44, %v304_v2  ;;  %v326_v6 = vsub.f32 %v293_v49, %v304_v2 }
 0x223   :  { %v310_v7 = vmul.f32 1.442695, %v308_v3  ;;  %v316_v8 = vmul.f32 1.442695, %v314_v4  ;;  %v322_v11 = vmul.f32 1.442695, %v320_v5 }
 0x224   :  { %v328_v20 = vmul.f32 1.442695, %v326_v6 }
 0x225   :  { %1906 = vpow2.f32 %v310_v7 }
 0x226   :  { %1908 = vpow2.f32 %v316_v8 }
 0x227   :  { %1910 = vpow2.f32 %v322_v11 }
 0x228   :  { %1912 = vpow2.f32 %v328_v20  ;;  %v307_v23 = vpop.xlane.xlu0 %306  ;;  %v539_v48 = vpop.permute.xlu2 %538 }
 0x229   :  { %v309_v26 = vsub.f32 %v189_v52, %v307_v23  ;;  %v315_v29 = vsub.f32 %v224_v55, %v307_v23  ;;  %v321_v32 = vsub.f32 %v259_v60, %v307_v23  ;;  %v327_v33 = vsub.f32 %v294_v62, %v307_v23 }
 0x22b   :  { %v2365_v34 = vpop.eup %1906  ;;  %v312_v35 = vmul.f32 1.442695, %v309_v26  ;;  %v318_v37 = vmul.f32 1.442695, %v315_v29  ;;  %v324_v38 = vmul.f32 1.442695, %v321_v32 }
 0x22c   :  { %v2367_v39 = vpop.eup %1908  ;;  %v330_v40 = vmul.f32 1.442695, %v327_v33  ;;  %1772 = vmatmul.msk.f32.vlgmr.msrb.gmra.mxu2 %vm301_vm2, %v2365_v34 }
 0x22d   :  { %v2371_v41 = vpop.eup %1910  ;;  %1914 = vpow2.f32 %v312_v35  ;;  %1770 = vmatmul.msk.f32.vlgmr.msra.gmra.mxu1 %vm301_vm2, %v2367_v39  ;;  %795 = vmatpush.msrb.mxu2 %v2305_v21 }
 0x22e   :  { %v2376_v42 = vpop.eup %1912  ;;  %1916 = vpow2.f32 %v318_v37  ;;  %1774 = vmatmul.msk.f32.vlgmr.msrb.gmra.mxu3 %vm301_vm2, %v2371_v41  ;;  %766 = vmatpush.msra.mxu1 %v2325_v27 }
 0x22f   :  { %1918 = vpow2.f32 %v324_v38  ;;  %1776 = vmatmul.msk.f32.vlgmr.msra.gmra.mxu0 %vm301_vm2, %v2376_v42  ;;  %824 = vmatpush.msrb.mxu3 %v2315_v24 }
 0x230   :  { %1920 = vpow2.f32 %v330_v40  ;;  %855 = vmatpush.msra.mxu0 %v2335_v30  ;;  %767 = vmatpush.msra.mxu1 %v2329_v28 }
 0x231   :  { %796 = vmatpush.msrb.mxu2 %v2307_v22  ;;  %825 = vmatpush.msrb.mxu3 %v2319_v25 }
 0x232   :  { %856 = vmatpush.msra.mxu0 %v2339_v31 }
 0x233   :  { %v2389_v43 = vpop.eup %1914 }
 0x234   :  { %v2391_v44 = vpop.eup %1916  ;;  %1773 = vmatmul.msk.f32.gmra.mxu2 %vm301_vm2, %v2389_v43 }
 0x235   :  { %v2395_v45 = vpop.eup %1918  ;;  %1771 = vmatmul.msk.f32.gmra.mxu1 %vm301_vm2, %v2391_v44 }
 0x236   :  { %v2399_v46 = vpop.eup %1920  ;;  %1775 = vmatmul.msk.f32.gmra.mxu3 %vm301_vm2, %v2395_v45 }
 0x237   :  { %1777 = vmatmul.msk.f32.gmra.mxu0 %vm301_vm2, %v2399_v46 }
 0x23c   :  { %1784 = vmatmul.msk.f32.vlgmr.msra.gmra.mxu2 %vm154_vm1, %v537_v47 }
 0x23d   :  { %1780 = vmatmul.msk.f32.vlgmr.msrb.gmra.mxu1 %vm154_vm1, %v537_v47  ;;  %1806 = vmatpush.xpose.msk.msra.mxu2 %vm154_vm1, %v2259_v12 }
 0x23e   :  { %1788 = vmatmul.msk.f32.vlgmr.msra.gmra.mxu3 %vm154_vm1, %v537_v47  ;;  %1802 = vmatpush.xpose.msk.msrb.mxu1 %vm154_vm1, %v2273_v16 }
 0x23f   :  { %1792 = vmatmul.msk.f32.vlgmr.msrb.gmra.mxu0 %vm154_vm1, %v537_v47  ;;  %1810 = vmatpush.xpose.msk.msra.mxu3 %vm154_vm1, %v2269_v15 }
 0x240   :  { %1814 = vmatpush.xpose.msk.msrb.mxu0 %vm154_vm1, %v2285_v18 }
 0x241   :  { %1807 = vmatpush.xpose.msk.msra.mxu2 %vm154_vm1, %v2261_v13 }
 0x242   :  { %1803 = vmatpush.xpose.msk.msrb.mxu1 %vm154_vm1, %v2279_v17 }
 0x243   :  { %1811 = vmatpush.xpose.msk.msra.mxu3 %vm154_vm1, %v2265_v14 }
 0x244   :  { %1815 = vmatpush.xpose.msk.msrb.mxu0 %vm154_vm1, %v2293_v19  ;;  %1785 = vmatmul.msk.f32.gmra.mxu2 %vm154_vm1, %v539_v48 }
 0x245   :  { %1781 = vmatmul.msk.f32.gmra.mxu1 %vm154_vm1, %v539_v48 }
 0x246   :  { %1789 = vmatmul.msk.f32.gmra.mxu3 %vm154_vm1, %v539_v48 }
 0x247   :  { %1793 = vmatmul.msk.f32.gmra.mxu0 %vm154_vm1, %v539_v48 }
 0x2aa   :  { %v419_v49 = vpop.f32.mrf.mxu1 }
 0x2ac   :  { %v526_v50 = vpop.f32.mrf.mxu0 }
 0x2af   :  { %v454_v52 = vpop.f32.mrf.mxu2 }
 0x2b0   :  { %v455_v53 = vadd.f32 %v454_v52, %v419_v49 }
 0x2b1   :  { %v489_v54 = vpop.f32.mrf.mxu3 }
 0x2b2   :  { %v495_v55 = vadd.f32 %v489_v54, %v455_v53  ;;  %v422_v56 = vpop.f32.mrf.mxu1 }
 0x2b4   :  { %v2429_v57 = vadd.f32 %v526_v50, %v495_v55  ;;  %v529_v58 = vpop.f32.mrf.mxu0 }
 0x2b7   :  { %v457_v59 = vpop.f32.mrf.mxu2 }
 0x2b8   :  { %v458_v60 = vadd.f32 %v457_v59, %v422_v56 }
 0x2b9   :  { %v492_v61 = vpop.f32.mrf.mxu3 }
 0x2ba   :  { %v496_v62 = vadd.f32 %v492_v61, %v458_v60  ;;  %v561_v63 = vpop.f32.mrf.mxu1 }
 0x2bb   :  { %v567_v2 = vmul.f32 0.35355338, %v561_v63 }
 0x2bc   :  { %v2431_v0 = vadd.f32 %v529_v58, %v496_v62  ;;  %v642_v1 = vpop.f32.mrf.mxu0 }
 0x2bd   :  { %v569_v6 = vadd.f32 %v567_v2, %v2347_v36  ;;  %v648_v7 = vmul.f32 0.35355338, %v642_v1 }
 0x2bf   :  { %v588_v3 = vpop.f32.mrf.mxu2  ;;  %v650_v32 = vadd.f32 %v648_v7, %v2347_v36 }
 0x2c0   :  { %v594_v4 = vmul.f32 0.35355338, %v588_v3 }
 0x2c1   :  { %v615_v5 = vpop.f32.mrf.mxu3 }
 0x2c2   :  { %v596_v8 = vadd.f32 %v594_v4, %v2347_v36  ;;  %v621_v11 = vmul.f32 0.35355338, %v615_v5  ;;  %v564_v20 = vpop.f32.mrf.mxu1 }
 0x2c3   :  { %v568_v29 = vmul.f32 0.35355338, %v564_v20 }
 0x2c4   :  { %v652_v23 = vmax.f32 %v569_v6, %v596_v8  ;;  %v623_v26 = vadd.f32 %v621_v11, %v2347_v36  ;;  %v645_v35 = vpop.f32.mrf.mxu0 }
 0x2c5   :  { %v570_v47 = vadd.f32 %v568_v29, %v2353_v51  ;;  %v649_v49 = vmul.f32 0.35355338, %v645_v35 }
 0x2c6   :  { %v654_v33 = vmax.f32 %v652_v23, %v623_v26 }
 0x2c7   :  { %v591_v37 = vpop.f32.mrf.mxu2  ;;  %v651_v56 = vadd.f32 %v649_v49, %v2353_v51 }
 0x2c8   :  { %v595_v38 = vmul.f32 0.35355338, %v591_v37  ;;  %v656_v40 = vmax.f32 %v654_v33, %v650_v32 }
 0x2c9   :  { %v618_v48 = vpop.f32.mrf.mxu3 }
 0x2ca   :  { %v597_v50 = vadd.f32 %v595_v38, %v2353_v51  ;;  %v622_v52 = vmul.f32 0.35355338, %v618_v48  ;;  %v658_v53 = vsel %vm301_vm2, %v656_v40, -inf }
 0x2cb   :  { %659 = vmax.xlane.f32.xlu1 %v658_v53 }
 0x2cc   :  { %v653_v54 = vmax.f32 %v570_v47, %v597_v50  ;;  %v624_v55 = vadd.f32 %v622_v52, %v2353_v51 }
 0x2ce   :  { %v655_v58 = vmax.f32 %v653_v54, %v624_v55 }
 0x2d0   :  { %v657_v59 = vmax.f32 %v655_v58, %v651_v56 }
 0x2d2   :  { %v661_v60 = vsel %vm301_vm2, %v657_v59, -inf }
 0x2d3   :  { %662 = vmax.xlane.f32.xlu0 %v661_v60 }
 0x2e4   :  { %1200 = vrot.lane.b32.xlu1 %v2243_v9, %s2163_s18 }
 0x2e7   :  { %868 = vrot.lane.b32.xlu0 %v2243_v9, %s2162_s17 }
 0x33e   :  { %v660_v61 = vpop.xlane.xlu1 %659 }
 0x33f   :  { %v664_v62 = vsub.f32 %v569_v6, %v660_v61  ;;  %v670_v63 = vsub.f32 %v596_v8, %v660_v61  ;;  %v676_v1 = vsub.f32 %v623_v26, %v660_v61  ;;  %v682_v2 = vsub.f32 %v650_v32, %v660_v61 }
 0x341   :  { %v666_v3 = vmul.f32 1.442695, %v664_v62  ;;  %v672_v4 = vmul.f32 1.442695, %v670_v63  ;;  %v678_v5 = vmul.f32 1.442695, %v676_v1 }
 0x342   :  { %v684_v7 = vmul.f32 1.442695, %v682_v2 }
 0x343   :  { %1922 = vpow2.f32 %v666_v3 }
 0x344   :  { %1924 = vpow2.f32 %v672_v4 }
 0x345   :  { %1926 = vpow2.f32 %v678_v5 }
 0x346   :  { %1928 = vpow2.f32 %v684_v7  ;;  %v663_v11 = vpop.xlane.xlu0 %662 }
 0x347   :  { %v665_v20 = vsub.f32 %v570_v47, %v663_v11  ;;  %v671_v23 = vsub.f32 %v597_v50, %v663_v11  ;;  %v677_v29 = vsub.f32 %v624_v55, %v663_v11  ;;  %v683_v33 = vsub.f32 %v651_v56, %v663_v11 }
 0x349   :  { %v2447_v35 = vpop.eup %1922  ;;  %v668_v9 = vmul.f32 1.442695, %v665_v20  ;;  %v674_v6 = vmul.f32 1.442695, %v671_v23  ;;  %v680_v8 = vmul.f32 1.442695, %v677_v29 }
 0x34a   :  { %v2449_v26 = vpop.eup %1924  ;;  %v686_v32 = vmul.f32 1.442695, %v683_v33  ;;  %1796 = vmatmul.msk.f32.vlgmr.msrb.gmra.mxu2 %vm301_vm2, %v2447_v35 }
 0x34b   :  { %v2453_v37 = vpop.eup %1926  ;;  %1930 = vpow2.f32 %v668_v9  ;;  %1794 = vmatmul.msk.f32.vlgmr.msra.gmra.mxu1 %vm301_vm2, %v2449_v26  ;;  %1127 = vmatpush.msrb.mxu2 %v2305_v21 }
 0x34c   :  { %v2458_v38 = vpop.eup %1928  ;;  %1932 = vpow2.f32 %v674_v6  ;;  %1798 = vmatmul.msk.f32.vlgmr.msrb.gmra.mxu3 %vm301_vm2, %v2453_v37  ;;  %1098 = vmatpush.msra.mxu1 %v2325_v27 }
 0x34d   :  { %1934 = vpow2.f32 %v680_v8  ;;  %1800 = vmatmul.msk.f32.vlgmr.msra.gmra.mxu0 %vm301_vm2, %v2458_v38  ;;  %1156 = vmatpush.msrb.mxu3 %v2315_v24 }
 0x34e   :  { %1936 = vpow2.f32 %v686_v32  ;;  %1187 = vmatpush.msra.mxu0 %v2335_v30  ;;  %1099 = vmatpush.msra.mxu1 %v2329_v28 }
 0x34f   :  { %1128 = vmatpush.msrb.mxu2 %v2307_v22  ;;  %1157 = vmatpush.msrb.mxu3 %v2319_v25 }
 0x350   :  { %1188 = vmatpush.msra.mxu0 %v2339_v31 }
 0x351   :  { %v2471_v40 = vpop.eup %1930 }
 0x352   :  { %v2473_v47 = vpop.eup %1932  ;;  %1797 = vmatmul.msk.f32.gmra.mxu2 %vm301_vm2, %v2471_v40 }
 0x353   :  { %v2477_v48 = vpop.eup %1934  ;;  %1795 = vmatmul.msk.f32.gmra.mxu1 %vm301_vm2, %v2473_v47 }
 0x354   :  { %v2481_v49 = vpop.eup %1936  ;;  %1799 = vmatmul.msk.f32.gmra.mxu3 %vm301_vm2, %v2477_v48 }
 0x355   :  { %1801 = vmatmul.msk.f32.gmra.mxu0 %vm301_vm2, %v2481_v49 }
 0x359   :  { %v869_v50 = vpop.permute.xlu0 %868 }
 0x35a   :  { %1808 = vmatmul.msk.f32.vlgmr.msra.gmra.mxu2 %vm154_vm1, %v869_v50 }
 0x35b   :  { %1804 = vmatmul.msk.f32.vlgmr.msrb.gmra.mxu1 %vm154_vm1, %v869_v50  ;;  %1830 = vmatpush.xpose.msk.msra.mxu2 %vm154_vm1, %v2259_v12  ;;  %v871_v12 = vpop.permute.xlu2 %870 }
 0x35c   :  { %1812 = vmatmul.msk.f32.vlgmr.msra.gmra.mxu3 %vm154_vm1, %v869_v50  ;;  %1826 = vmatpush.xpose.msk.msrb.mxu1 %vm154_vm1, %v2273_v16 }
 0x35d   :  { %1816 = vmatmul.msk.f32.vlgmr.msrb.gmra.mxu0 %vm154_vm1, %v869_v50  ;;  %1834 = vmatpush.xpose.msk.msra.mxu3 %vm154_vm1, %v2269_v15 }
 0x35e   :  { %1838 = vmatpush.xpose.msk.msrb.mxu0 %vm154_vm1, %v2285_v18 }
 0x35f   :  { %1831 = vmatpush.xpose.msk.msra.mxu2 %vm154_vm1, %v2261_v13 }
 0x360   :  { %1827 = vmatpush.xpose.msk.msrb.mxu1 %vm154_vm1, %v2279_v17 }
 0x361   :  { %1835 = vmatpush.xpose.msk.msra.mxu3 %vm154_vm1, %v2265_v14 }
 0x362   :  { %1839 = vmatpush.xpose.msk.msrb.mxu0 %vm154_vm1, %v2293_v19  ;;  %1809 = vmatmul.msk.f32.gmra.mxu2 %vm154_vm1, %v871_v12 }
 0x363   :  { %1805 = vmatmul.msk.f32.gmra.mxu1 %vm154_vm1, %v871_v12 }
 0x364   :  { %1813 = vmatmul.msk.f32.gmra.mxu3 %vm154_vm1, %v871_v12 }
 0x365   :  { %1817 = vmatmul.msk.f32.gmra.mxu0 %vm154_vm1, %v871_v12 }
 0x3c8   :  { %v769_v15 = vpop.f32.mrf.mxu1 }
 0x3ca   :  { %v858_v13 = vpop.f32.mrf.mxu0 }
 0x3cd   :  { %v798_v16 = vpop.f32.mrf.mxu2 }
 0x3ce   :  { %v799_v18 = vadd.f32 %v798_v16, %v769_v15 }
 0x3cf   :  { %v827_v17 = vpop.f32.mrf.mxu3 }
 0x3d0   :  { %v833_v52 = vadd.f32 %v827_v17, %v799_v18  ;;  %v772_v53 = vpop.f32.mrf.mxu1 }
 0x3d2   :  { %v2511_v54 = vadd.f32 %v858_v13, %v833_v52  ;;  %v861_v14 = vpop.f32.mrf.mxu0 }
 0x3d5   :  { %v801_v55 = vpop.f32.mrf.mxu2 }
 0x3d6   :  { %v802_v19 = vadd.f32 %v801_v55, %v772_v53 }
 0x3d7   :  { %v830_v56 = vpop.f32.mrf.mxu3 }
 0x3d8   :  { %v834_v58 = vadd.f32 %v830_v56, %v802_v19  ;;  %v893_v59 = vpop.f32.mrf.mxu1 }
 0x3d9   :  { %v899_v62 = vmul.f32 0.35355338, %v893_v59  ;;  %v354_v59 = vsel %vm301_vm2, %v2376_v42, 0.0 }
 0x3da   :  { %v2513_v60 = vadd.f32 %v861_v14, %v834_v58  ;;  %v974_v61 = vpop.f32.mrf.mxu0  ;;  %v702_v58 = vsel %vm301_vm2, %v2453_v37, 0.0 }
 0x3db   :  { %v901_v3 = vadd.f32 %v899_v62, %v2347_v36  ;;  %v980_v4 = vmul.f32 0.35355338, %v974_v61  ;;  %v705_v61 = vsel %vm301_vm2, %v2477_v48, 0.0  ;;  %v341_v62 = vsel %vm301_vm2, %v2391_v44, 0.0 }
 0x3dd   :  { %v920_v63 = vpop.f32.mrf.mxu2  ;;  %v982_v33 = vadd.f32 %v980_v4, %v2347_v36 }
 0x3de   :  { %v926_v1 = vmul.f32 0.35355338, %v920_v63 }
 0x3df   :  { %v947_v2 = vpop.f32.mrf.mxu3 }
 0x3e0   :  { %v928_v5 = vadd.f32 %v926_v1, %v2347_v36  ;;  %v953_v7 = vmul.f32 0.35355338, %v947_v2  ;;  %v896_v11 = vpop.f32.mrf.mxu1 }
 0x3e1   :  { %v900_v29 = vmul.f32 0.35355338, %v896_v11 }
 0x3e2   :  { %v984_v20 = vmax.f32 %v901_v3, %v928_v5  ;;  %v955_v23 = vadd.f32 %v953_v7, %v2347_v36  ;;  %v977_v6 = vpop.f32.mrf.mxu0 }
 0x3e3   :  { %v902_v12 = vadd.f32 %v900_v29, %v2353_v51  ;;  %v981_v13 = vmul.f32 0.35355338, %v977_v6 }
 0x3e4   :  { %v986_v9 = vmax.f32 %v984_v20, %v955_v23 }
 0x3e5   :  { %v923_v8 = vpop.f32.mrf.mxu2  ;;  %v983_v14 = vadd.f32 %v981_v13, %v2353_v51 }
 0x3e6   :  { %v927_v32 = vmul.f32 0.35355338, %v923_v8  ;;  %v988_v50 = vmax.f32 %v986_v9, %v982_v33 }
 0x3e7   :  { %v950_v15 = vpop.f32.mrf.mxu3 }
 0x3e8   :  { %v929_v16 = vadd.f32 %v927_v32, %v2353_v51  ;;  %v954_v18 = vmul.f32 0.35355338, %v950_v15  ;;  %v990_v17 = vsel %vm301_vm2, %v988_v50, -inf }
 0x3e9   :  { %991 = vmax.xlane.f32.xlu2 %v990_v17 }
 0x3ea   :  { %v985_v52 = vmax.f32 %v902_v12, %v929_v16  ;;  %v956_v53 = vadd.f32 %v954_v18, %v2353_v51 }
 0x3ec   :  { %v987_v55 = vmax.f32 %v985_v52, %v956_v53 }
 0x3ee   :  { %v989_v19 = vmax.f32 %v987_v55, %v983_v14 }
 0x3f0   :  { %v993_v56 = vsel %vm301_vm2, %v989_v19, -inf }
 0x3f1   :  { %994 = vmax.xlane.f32.xlu0 %v993_v56 }
 0x401   :  { %1202 = vrot.lane.b32.xlu2 %v2245_v10, %s2163_s18 }
 0x42a   :  { %703 = vadd.xlane.f32.xlu2 %v702_v58 }
 0x432   :  { %355 = vadd.xlane.f32.xlu2 %v354_v59 }
 0x43a   :  { %706 = vadd.xlane.f32.xlu2 %v705_v61 }
 0x442   :  { %342 = vadd.xlane.f32.xlu2 %v341_v62 }
 0x45c   :  { %v992_v63 = vpop.xlane.xlu2 %991 }
 0x45d   :  { %v996_v1 = vsub.f32 %v901_v3, %v992_v63  ;;  %v1002_v2 = vsub.f32 %v928_v5, %v992_v63  ;;  %v1008_v10 = vsub.f32 %v955_v23, %v992_v63  ;;  %v1014_v4 = vsub.f32 %v982_v33, %v992_v63 }
 0x45f   :  { %v998_v7 = vmul.f32 1.442695, %v996_v1  ;;  %v1004_v37 = vmul.f32 1.442695, %v1002_v2  ;;  %v1010_v11 = vmul.f32 1.442695, %v1008_v10 }
 0x460   :  { %v1016_v20 = vmul.f32 1.442695, %v1014_v4 }
 0x461   :  { %1938 = vpow2.f32 %v998_v7 }
 0x462   :  { %1940 = vpow2.f32 %v1004_v37 }
 0x463   :  { %1942 = vpow2.f32 %v1010_v11 }
 0x464   :  { %1944 = vpow2.f32 %v1016_v20  ;;  %v995_v42 = vpop.xlane.xlu0 %994 }
 0x465   :  { %v997_v48 = vsub.f32 %v902_v12, %v995_v42  ;;  %v1003_v29 = vsub.f32 %v929_v16, %v995_v42  ;;  %v1009_v9 = vsub.f32 %v956_v53, %v995_v42  ;;  %v1015_v6 = vsub.f32 %v983_v14, %v995_v42 }
 0x467   :  { %v2535_v44 = vpop.eup %1938  ;;  %v1000_v8 = vmul.f32 1.442695, %v997_v48  ;;  %v1006_v3 = vmul.f32 1.442695, %v1003_v29  ;;  %v1012_v5 = vmul.f32 1.442695, %v1009_v9 }
 0x468   :  { %v2537_v23 = vpop.eup %1940  ;;  %v1018_v33 = vmul.f32 1.442695, %v1015_v6  ;;  %1820 = vmatmul.msk.f32.vlgmr.msrb.gmra.mxu2 %vm301_vm2, %v2535_v44 }
 0x469   :  { %v2541_v32 = vpop.eup %1942  ;;  %1946 = vpow2.f32 %v1000_v8  ;;  %1818 = vmatmul.msk.f32.vlgmr.msra.gmra.mxu1 %vm301_vm2, %v2537_v23  ;;  %1459 = vmatpush.msrb.mxu2 %v2305_v21 }
 0x46a   :  { %v2546_v50 = vpop.eup %1944  ;;  %1948 = vpow2.f32 %v1006_v3  ;;  %1822 = vmatmul.msk.f32.vlgmr.msrb.gmra.mxu3 %vm301_vm2, %v2541_v32  ;;  %1430 = vmatpush.msra.mxu1 %v2325_v27 }
 0x46b   :  { %1950 = vpow2.f32 %v1012_v5  ;;  %1824 = vmatmul.msk.f32.vlgmr.msra.gmra.mxu0 %vm301_vm2, %v2546_v50  ;;  %1488 = vmatpush.msrb.mxu3 %v2315_v24 }
 0x46c   :  { %1952 = vpow2.f32 %v1018_v33  ;;  %1519 = vmatpush.msra.mxu0 %v2335_v30  ;;  %1431 = vmatpush.msra.mxu1 %v2329_v28 }
 0x46d   :  { %1460 = vmatpush.msrb.mxu2 %v2307_v22  ;;  %1489 = vmatpush.msrb.mxu3 %v2319_v25  ;;  %v1201_v22 = vpop.permute.xlu1 %1200  ;;  %v1203_v25 = vpop.permute.xlu2 %1202 }
 0x46e   :  { %1520 = vmatpush.msra.mxu0 %v2339_v31 }
 0x46f   :  { %v2559_v21 = vpop.eup %1946 }
 0x470   :  { %v2561_v27 = vpop.eup %1948  ;;  %1821 = vmatmul.msk.f32.gmra.mxu2 %vm301_vm2, %v2559_v21 }
 0x471   :  { %v2565_v12 = vpop.eup %1950  ;;  %1819 = vmatmul.msk.f32.gmra.mxu1 %vm301_vm2, %v2561_v27 }
 0x472   :  { %v2569_v24 = vpop.eup %1952  ;;  %1823 = vmatmul.msk.f32.gmra.mxu3 %vm301_vm2, %v2565_v12 }
 0x473   :  { %1825 = vmatmul.msk.f32.gmra.mxu0 %vm301_vm2, %v2569_v24 }
 0x478   :  { %1832 = vmatmul.msk.f32.vlgmr.msra.gmra.mxu2 %vm154_vm1, %v1201_v22 }
 0x479   :  { %1828 = vmatmul.msk.f32.vlgmr.msrb.gmra.mxu1 %vm154_vm1, %v1201_v22 }
 0x47a   :  { %1836 = vmatmul.msk.f32.vlgmr.msra.gmra.mxu3 %vm154_vm1, %v1201_v22 }
 0x47b   :  { %1840 = vmatmul.msk.f32.vlgmr.msrb.gmra.mxu0 %vm154_vm1, %v1201_v22 }
 0x480   :  { %1833 = vmatmul.msk.f32.gmra.mxu2 %vm154_vm1, %v1203_v25 }
 0x481   :  { %1829 = vmatmul.msk.f32.gmra.mxu1 %vm154_vm1, %v1203_v25 }
 0x482   :  { %1837 = vmatmul.msk.f32.gmra.mxu3 %vm154_vm1, %v1203_v25 }
 0x483   :  { %1841 = vmatmul.msk.f32.gmra.mxu0 %vm154_vm1, %v1203_v25 }
 0x4e6   :  { %v1101_v28 = vpop.f32.mrf.mxu1 }
 0x4e8   :  { %v1190_v30 = vpop.f32.mrf.mxu0 }
 0x4eb   :  { %v1130_v31 = vpop.f32.mrf.mxu2 }
 0x4ec   :  { %v1131_v15 = vadd.f32 %v1130_v31, %v1101_v28 }
 0x4ed   :  { %v1159_v13 = vpop.f32.mrf.mxu3 }
 0x4ee   :  { %v1165_v16 = vadd.f32 %v1159_v13, %v1131_v15  ;;  %v1104_v18 = vpop.f32.mrf.mxu1 }
 0x4f0   :  { %v2583_v17 = vadd.f32 %v1190_v30, %v1165_v16  ;;  %v1193_v52 = vpop.f32.mrf.mxu0 }
 0x4f3   :  { %v1133_v53 = vpop.f32.mrf.mxu2 }
 0x4f4   :  { %v1134_v14 = vadd.f32 %v1133_v53, %v1104_v18  ;;  %v332_v18 = vsel %vm301_vm2, %v2365_v34, 0.0  ;;  %v710_v53 = vsel %vm301_vm2, %v2458_v38, 0.0  ;;  %v691_v34 = vsel %vm301_vm2, %v2471_v40, 0.0 }
 0x4f5   :  { %v1162_v55 = vpop.f32.mrf.mxu3  ;;  %v1023_v38 = vsel %vm301_vm2, %v2559_v21, 0.0  ;;  %v1034_v40 = vsel %vm301_vm2, %v2541_v32, 0.0  ;;  %v335_v32 = vsel %vm301_vm2, %v2389_v43, 0.0 }
 0x4f6   :  { %v1166_v19 = vadd.f32 %v1162_v55, %v1134_v14  ;;  %v1225_v56 = vpop.f32.mrf.mxu1  ;;  %v688_v14 = vsel %vm301_vm2, %v2447_v35, 0.0  ;;  %v694_v55 = vsel %vm301_vm2, %v2449_v26, 0.0  ;;  %v1026_v35 = vsel %vm301_vm2, %v2537_v23, 0.0 }
 0x4f7   :  { %v1231_v61 = vmul.f32 0.35355338, %v1225_v56  ;;  %v713_v26 = vsel %vm301_vm2, %v2481_v49, 0.0  ;;  %v1042_v23 = vsel %vm301_vm2, %v2546_v50, 0.0  ;;  %v1029_v49 = vsel %vm301_vm2, %v2561_v27, 0.0 }
 0x4f8   :  { %v2585_v58 = vadd.f32 %v1193_v52, %v1166_v19  ;;  %v1306_v59 = vpop.f32.mrf.mxu0  ;;  %v1020_v19 = vsel %vm301_vm2, %v2535_v44, 0.0  ;;  %v349_v44 = vsel %vm301_vm2, %v2395_v45, 0.0  ;;  %v1037_v45 = vsel %vm301_vm2, %v2565_v12, 0.0 }
 0x4f9   :  { %v2588_v2 = vadd.f32 %v1231_v61, %v2347_v36  ;;  %v1312_v10 = vmul.f32 0.35355338, %v1306_v59  ;;  %v1045_v50 = vsel %vm301_vm2, %v2569_v24, 0.0 }
 0x4fb   :  { %v1252_v62 = vpop.f32.mrf.mxu2  ;;  %v2599_v48 = vadd.f32 %v1312_v10, %v2347_v36 }
 0x4fc   :  { %v1258_v63 = vmul.f32 0.35355338, %v1252_v62 }
 0x4fd   :  { %v1279_v1 = vpop.f32.mrf.mxu3 }
 0x4fe   :  { %v2591_v4 = vadd.f32 %v1258_v63, %v2347_v36  ;;  %v1285_v7 = vmul.f32 0.35355338, %v1279_v1  ;;  %v1228_v37 = vpop.f32.mrf.mxu1 }
 0x4ff   :  { %v1232_v42 = vmul.f32 0.35355338, %v1228_v37 }
 0x500   :  { %v1316_v11 = vmax.f32 %v2588_v2, %v2591_v4  ;;  %v2596_v20 = vadd.f32 %v1285_v7, %v2347_v36  ;;  %v1309_v9 = vpop.f32.mrf.mxu0 }
 0x501   :  { %v2604_v5 = vadd.f32 %v1232_v42, %v2353_v51  ;;  %v1313_v22 = vmul.f32 0.35355338, %v1309_v9 }
 0x502   :  { %v1318_v29 = vmax.f32 %v1316_v11, %v2596_v20 }
 0x503   :  { %v1255_v6 = vpop.f32.mrf.mxu2  ;;  %v2616_v15 = vadd.f32 %v1313_v22, %v2353_v51 }
 0x504   :  { %v1259_v8 = vmul.f32 0.35355338, %v1255_v6  ;;  %v1320_v3 = vmax.f32 %v1318_v29, %v2599_v48 }
 0x505   :  { %v1282_v33 = vpop.f32.mrf.mxu3 }
 0x506   :  { %v2607_v25 = vadd.f32 %v1259_v8, %v2353_v51  ;;  %v1286_v28 = vmul.f32 0.35355338, %v1282_v33  ;;  %v1322_v30 = vsel %vm301_vm2, %v1320_v3, -inf }
 0x507   :  { %1323 = vmax.xlane.f32.xlu1 %v1322_v30  ;;  %v1533_v30 = vld [vmem:[#allocation8 + $0x8] sm:$0xff] }
 0x508   :  { %v1317_v36 = vmax.f32 %v2604_v5, %v2607_v25  ;;  %v2613_v31 = vadd.f32 %v1286_v28, %v2353_v51  ;;  %v346_v51 = vsel %vm301_vm2, %v2371_v41, 0.0  ;;  %v338_v41 = vsel %vm301_vm2, %v2367_v39, 0.0  ;;  %1594 = vmatpush.msra.mxu2 %v1533_v30 }
 0x509   :  { %v697_v39 = vsel %vm301_vm2, %v2473_v47, 0.0 }
 0x50a   :  { %v1319_v13 = vmax.f32 %v1317_v36, %v2613_v31 }
 0x50c   :  { %v1321_v16 = vmax.f32 %v1319_v13, %v2616_v15 }
 0x50e   :  { %v1325_v52 = vsel %vm301_vm2, %v1321_v16, -inf  ;;  %v704_v16 = vpop.xlane.xlu2 %703 }
 0x50f   :  { %333 = vadd.xlane.f32.xlu1 %v332_v18  ;;  %1326 = vmax.xlane.f32.xlu0 %v1325_v52 }
 0x517   :  { %711 = vadd.xlane.f32.xlu1 %v710_v53  ;;  %689 = vadd.xlane.f32.xlu0 %v688_v14 }
 0x51f   :  { %347 = vadd.xlane.f32.xlu1 %v346_v51  ;;  %695 = vadd.xlane.f32.xlu0 %v694_v55 }
 0x527   :  { %692 = vadd.xlane.f32.xlu1 %v691_v34  ;;  %1021 = vadd.xlane.f32.xlu0 %v1020_v19 }
 0x52f   :  { %1027 = vadd.xlane.f32.xlu0 %v1026_v35  ;;  %1024 = vadd.xlane.f32.xlu1 %v1023_v38 }
 0x537   :  { %339 = vadd.xlane.f32.xlu0 %v338_v41  ;;  %714 = vadd.xlane.f32.xlu1 %v713_v26 }
 0x53f   :  { %1035 = vadd.xlane.f32.xlu0 %v1034_v40  ;;  %350 = vadd.xlane.f32.xlu1 %v349_v44 }
 0x547   :  { %1043 = vadd.xlane.f32.xlu0 %v1042_v23 }
 0x54f   :  { %698 = vadd.xlane.f32.xlu0 %v697_v39  ;;  %v1532_v39 = vld [vmem:[#allocation8] sm:$0xff] }
 0x550   :  { %1563 = vmatpush.msrb.mxu1 %v1532_v39 }
 0x557   :  { %1030 = vadd.xlane.f32.xlu0 %v1029_v49 }
 0x55f   :  { %336 = vadd.xlane.f32.xlu0 %v335_v32 }
 0x567   :  { %1038 = vadd.xlane.f32.xlu0 %v1037_v45 }
 0x56f   :  { %1046 = vadd.xlane.f32.xlu0 %v1045_v50 }
 0x57a   :  { %v1324_v21 = vpop.xlane.xlu1 %1323 }
 0x57b   :  { %v1328_v47 = vsub.f32 %v2588_v2, %v1324_v21  ;;  %v1334_v56 = vsub.f32 %v2591_v4, %v1324_v21  ;;  %v1340_v27 = vsub.f32 %v2596_v20, %v1324_v21  ;;  %v1346_v59 = vsub.f32 %v2599_v48, %v1324_v21 }
 0x57d   :  { %v1330_v61 = vmul.f32 1.442695, %v1328_v47  ;;  %v1336_v43 = vmul.f32 1.442695, %v1334_v56  ;;  %v1342_v62 = vmul.f32 1.442695, %v1340_v27 }
 0x57e   :  { %v1348_v63 = vmul.f32 1.442695, %v1346_v59  ;;  %v1534_v27 = vld [vmem:[#allocation8 + $0x10] sm:$0xff] }
 0x57f   :  { %1954 = vpow2.f32 %v1330_v61  ;;  %1625 = vmatpush.msra.mxu3 %v1534_v27  ;;  %v356_v61 = vpop.xlane.xlu2 %355 }
 0x580   :  { %1956 = vpow2.f32 %v1336_v43 }
 0x581   :  { %1958 = vpow2.f32 %v1342_v62 }
 0x582   :  { %1960 = vpow2.f32 %v1348_v63  ;;  %v1327_v12 = vpop.xlane.xlu0 %1326  ;;  %v334_v3 = vpop.xlane.xlu1 %333 }
 0x583   :  { %v1329_v24 = vsub.f32 %v2604_v5, %v1327_v12  ;;  %v1335_v1 = vsub.f32 %v2607_v25, %v1327_v12  ;;  %v1341_v2 = vsub.f32 %v2613_v31, %v1327_v12  ;;  %v1347_v10 = vsub.f32 %v2616_v15, %v1327_v12 }
 0x584   :  { %v357_v31 = vsel %vm301_vm2, %v2399_v46, 0.0 }
 0x585   :  { %v1955_v4 = vpop.eup %1954  ;;  %v1332_v7 = vmul.f32 1.442695, %v1329_v24  ;;  %v1338_v37 = vmul.f32 1.442695, %v1335_v1  ;;  %v1344_v11 = vmul.f32 1.442695, %v1341_v2 }
 0x586   :  { %v1957_v20 = vpop.eup %1956  ;;  %v1350_v42 = vmul.f32 1.442695, %v1347_v10  ;;  %1844 = vmatmul.msk.f32.vlgmr.msrb.gmra.mxu2 %vm301_vm2, %v1955_v4  ;;  %v1352_v48 = vsel %vm301_vm2, %v1955_v4, 0.0 }
 0x587   :  { %v1959_v29 = vpop.eup %1958  ;;  %1962 = vpow2.f32 %v1332_v7  ;;  %1842 = vmatmul.msk.f32.vlgmr.msra.gmra.mxu1 %vm301_vm2, %v1957_v20  ;;  %1353 = vadd.xlane.f32.xlu2 %v1352_v48  ;;  %v1358_v9 = vsel %vm301_vm2, %v1957_v20, 0.0 }
 0x588   :  { %v1961_v6 = vpop.eup %1960  ;;  %1964 = vpow2.f32 %v1338_v37  ;;  %1846 = vmatmul.msk.f32.vlgmr.msrb.gmra.mxu3 %vm301_vm2, %v1959_v29  ;;  %1359 = vadd.xlane.f32.xlu1 %v1358_v9  ;;  %v1366_v22 = vsel %vm301_vm2, %v1959_v29, 0.0 }
 0x589   :  { %1966 = vpow2.f32 %v1344_v11  ;;  %1848 = vmatmul.msk.f32.vlgmr.msra.gmra.mxu0 %vm301_vm2, %v1961_v6  ;;  %v1374_v53 = vsel %vm301_vm2, %v1961_v6, 0.0 }
 0x58a   :  { %1968 = vpow2.f32 %v1350_v42  ;;  %v690_v8 = vpop.xlane.xlu0 %689  ;;  %v712_v52 = vpop.xlane.xlu1 %711 }
 0x58d   :  { %v1963_v5 = vpop.eup %1962 }
 0x58e   :  { %v1965_v33 = vpop.eup %1964  ;;  %1845 = vmatmul.msk.f32.gmra.mxu2 %vm301_vm2, %v1963_v5  ;;  %v1355_v25 = vsel %vm301_vm2, %v1963_v5, 0.0 }
 0x58f   :  { %v1967_v28 = vpop.eup %1966  ;;  %1843 = vmatmul.msk.f32.gmra.mxu1 %vm301_vm2, %v1965_v33  ;;  %1367 = vadd.xlane.f32.xlu2 %v1366_v22  ;;  %v1361_v34 = vsel %vm301_vm2, %v1965_v33, 0.0  ;;  %v707_v33 = vpop.xlane.xlu2 %706 }
 0x590   :  { %v1969_v36 = vpop.eup %1968  ;;  %1847 = vmatmul.msk.f32.gmra.mxu3 %vm301_vm2, %v1967_v28  ;;  %1356 = vadd.xlane.f32.xlu0 %v1355_v25  ;;  %v1369_v55 = vsel %vm301_vm2, %v1967_v28, 0.0 }
 0x591   :  { %1849 = vmatmul.msk.f32.gmra.mxu0 %vm301_vm2, %v1969_v36  ;;  %358 = vadd.xlane.f32.xlu1 %v357_v31  ;;  %v1377_v51 = vsel %vm301_vm2, %v1969_v36, 0.0 }
 0x592   :  { %v696_v15 = vpop.xlane.xlu0 %695  ;;  %v348_v32 = vpop.xlane.xlu1 %347 }
 0x593   :  { %v700_v13 = vadd.f32 %v696_v15, %v690_v8 }
 0x595   :  { %v708_v18 = vadd.f32 %v704_v16, %v700_v13 }
 0x597   :  { %v716_v14 = vadd.f32 %v712_v52, %v708_v18  ;;  %1375 = vadd.xlane.f32.xlu2 %v1374_v53 }
 0x598   :  { %1378 = vadd.xlane.f32.xlu0 %v1377_v51 }
 0x599   :  { %1970 = vrcp.f32 %v716_v14  ;;  %1370 = vadd.xlane.f32.xlu1 %v1369_v55  ;;  %v729_v26 = vand.u32 2147483648, %v716_v14  ;;  %v727_v44 = vand.u32 2147483647, %v716_v14  ;;  %vm723_vm4 = vweird.f32 %v716_v14 }
 0x59a   :  { %v1022_v46 = vpop.xlane.xlu0 %1021  ;;  %v693_v62 = vpop.xlane.xlu1 %692 }
 0x59b   :  { %v730_v49 = vor.u32 1.1754944e-38, %v729_v26  ;;  %vm728_vm6 = vcmp.eq.f32.partialorder %v727_v44, 8.507059e+37 }
 0x59f   :  { %v1971_v19 = vpop.eup %1970  ;;  %1362 = vadd.xlane.f32.xlu2 %v1361_v34 }
 0x5a0   :  { %v719_v35 = vmul.f32 %v1971_v19, %v716_v14  ;;  %vm724_vm3 = vweird.f32 %v1971_v19 }
 0x5a1   :  { %vm725_vm5 = vmor %vm723_vm4, %vm724_vm3 }
 0x5a2   :  { %v720_v38 = vsub.f32 1.0, %v719_v35  ;;  %v1028_v41 = vpop.xlane.xlu0 %1027 }
 0x5a3   :  { %v1032_v24 = vadd.f32 %v1028_v41, %v1022_v46 }
 0x5a4   :  { %v721_v40 = vmul.f32 %v1971_v19, %v720_v38 }
 0x5a6   :  { %v722_v23 = vadd.f32 %v1971_v19, %v721_v40 }
 0x5a8   :  { %v726_v45 = vsel %vm725_vm5, %v1971_v19, %v722_v23 }
 0x5a9   :  { %v731_v50 = vsel %vm728_vm6, %v730_v49, %v726_v45 }
 0x5aa   :  { %v340_v21 = vpop.xlane.xlu0 %339  ;;  %v866_v47 = vmul.f32 %v2511_v54, %v731_v50  ;;  %v1025_v54 = vpop.xlane.xlu1 %1024 }
 0x5ab   :  { %v344_v56 = vadd.f32 %v340_v21, %v334_v3 }
 0x5ac   :  { %1852 = vmatmul.msk.f32.vlgmr.msra.gmra.mxu2 %vm154_vm1, %v866_v47 }
 0x5ad   :  { %v352_v59 = vadd.f32 %v348_v32, %v344_v56 }
 0x5af   :  { %v360_v43 = vadd.f32 %v356_v61, %v352_v59  ;;  %v343_v61 = vpop.xlane.xlu2 %342 }
 0x5b1   :  { %1972 = vrcp.f32 %v360_v43  ;;  %v373_v7 = vand.u32 2147483648, %v360_v43  ;;  %v371_v20 = vand.u32 2147483647, %v360_v43  ;;  %vm367_vm8 = vweird.f32 %v360_v43 }
 0x5b2   :  { %v1036_v63 = vpop.xlane.xlu0 %1035  ;;  %v715_v28 = vpop.xlane.xlu1 %714 }
 0x5b3   :  { %v1040_v2 = vadd.f32 %v1036_v63, %v1032_v24  ;;  %v374_v48 = vor.u32 1.1754944e-38, %v373_v7  ;;  %vm372_vm10 = vcmp.eq.f32.partialorder %v371_v20, 8.507059e+37 }
 0x5b7   :  { %v1973_v12 = vpop.eup %1972 }
 0x5b8   :  { %v363_v1 = vmul.f32 %v1973_v12, %v360_v43  ;;  %vm368_vm7 = vweird.f32 %v1973_v12 }
 0x5b9   :  { %vm369_vm9 = vmor %vm367_vm8, %vm368_vm7 }
 0x5ba   :  { %v364_v10 = vsub.f32 1.0, %v363_v1  ;;  %v1044_v4 = vpop.xlane.xlu0 %1043 }
 0x5bb   :  { %v1048_v37 = vadd.f32 %v1044_v4, %v1040_v2  ;;  %v1535_v2 = vld [vmem:[#allocation8 + $0x18] sm:$0xff] }
 0x5bc   :  { %v365_v11 = vmul.f32 %v1973_v12, %v364_v10  ;;  %1656 = vmatpush.msrb.mxu0 %v1535_v2 }
 0x5bd   :  { %1974 = vrcp.f32 %v1048_v37  ;;  %v1061_v36 = vand.u32 2147483648, %v1048_v37  ;;  %v1059_v13 = vand.u32 2147483647, %v1048_v37  ;;  %vm1055_vm12 = vweird.f32 %v1048_v37 }
 0x5be   :  { %v366_v42 = vadd.f32 %v1973_v12, %v365_v11 }
 0x5bf   :  { %vm1060_vm14 = vcmp.eq.f32.partialorder %v1059_v13, 8.507059e+37 }
 0x5c0   :  { %v370_v29 = vsel %vm369_vm9, %v1973_v12, %v366_v42 }
 0x5c1   :  { %v375_v9 = vsel %vm372_vm10, %v374_v48, %v370_v29 }
 0x5c2   :  { %v699_v6 = vpop.xlane.xlu0 %698  ;;  %v534_v8 = vmul.f32 %v2429_v57, %v375_v9  ;;  %v1062_v57 = vor.u32 1.1754944e-38, %v1061_v36 }
 0x5c3   :  { %v1975_v3 = vpop.eup %1974  ;;  %v701_v5 = vadd.f32 %v699_v6, %v693_v62  ;;  %v351_v62 = vpop.xlane.xlu1 %350 }
 0x5c4   :  { %v1051_v22 = vmul.f32 %v1975_v3, %v1048_v37  ;;  %1850 = vmatmul.msk.f32.vlgmr.msrb.gmra.mxu1 %vm154_vm1, %v534_v8  ;;  %vm1056_vm11 = vweird.f32 %v1975_v3 }
 0x5c5   :  { %v709_v25 = vadd.f32 %v707_v33, %v701_v5  ;;  %vm1057_vm13 = vmor %vm1055_vm12, %vm1056_vm11 }
 0x5c6   :  { %v1052_v30 = vsub.f32 1.0, %v1051_v22 }
 0x5c7   :  { %v717_v31 = vadd.f32 %v715_v28, %v709_v25 }
 0x5c8   :  { %v1053_v15 = vmul.f32 %v1975_v3, %v1052_v30 }
 0x5c9   :  { %1976 = vrcp.f32 %v717_v31  ;;  %v743_v19 = vand.u32 2147483648, %v717_v31  ;;  %v741_v38 = vand.u32 2147483647, %v717_v31  ;;  %vm737_vm2 = vweird.f32 %v717_v31 }
 0x5ca   :  { %v1054_v16 = vadd.f32 %v1975_v3, %v1053_v15  ;;  %v1031_v18 = vpop.xlane.xlu0 %1030 }
 0x5cb   :  { %v744_v26 = vor.u32 1.1754944e-38, %v743_v19  ;;  %vm742_vm4 = vcmp.eq.f32.partialorder %v741_v38, 8.507059e+37  ;;  %v1033_v39 = vadd.f32 %v1031_v18, %v1025_v54 }
 0x5cc   :  { %v1058_v52 = vsel %vm1057_vm13, %v1975_v3, %v1054_v16 }
 0x5cd   :  { %v1063_v53 = vsel %vm1060_vm14, %v1062_v57, %v1058_v52 }
 0x5ce   :  { %v1198_v14 = vmul.f32 %v2583_v17, %v1063_v53 }
 0x5cf   :  { %v1977_v51 = vpop.eup %1976 }
 0x5d0   :  { %1854 = vmatmul.msk.f32.vlgmr.msra.gmra.mxu3 %vm154_vm1, %v1198_v14  ;;  %v733_v55 = vmul.f32 %v1977_v51, %v717_v31  ;;  %vm738_vm15 = vweird.f32 %v1977_v51 }
 0x5d1   :  { %vm739_vm3 = vmor %vm737_vm2, %vm738_vm15 }
 0x5d2   :  { %v337_v46 = vpop.xlane.xlu0 %336  ;;  %v734_v34 = vsub.f32 1.0, %v733_v55 }
 0x5d3   :  { %v345_v4 = vadd.f32 %v343_v61, %v337_v46 }
 0x5d4   :  { %v735_v35 = vmul.f32 %v1977_v51, %v734_v34 }
 0x5d5   :  { %v353_v37 = vadd.f32 %v351_v62, %v345_v4  ;;  %v1992_v4 = vld [vmem:[#allocation2] sm:$0xff] }
 0x5d6   :  { %v736_v41 = vadd.f32 %v1977_v51, %v735_v35 }
 0x5d8   :  { %v740_v40 = vsel %vm739_vm3, %v1977_v51, %v736_v41 }
 0x5d9   :  { %v745_v44 = vsel %vm742_vm4, %v744_v26, %v740_v40 }
 0x5da   :  { %v1039_v23 = vpop.xlane.xlu0 %1038  ;;  %v867_v17 = vmul.f32 %v2513_v60, %v745_v44 }
 0x5db   :  { %v1041_v49 = vadd.f32 %v1039_v23, %v1033_v39 }
 0x5dc   :  { %1853 = vmatmul.msk.f32.gmra.mxu2 %vm154_vm1, %v867_v17 }
 0x5e2   :  { %v1047_v32 = vpop.xlane.xlu0 %1046 }
 0x5e3   :  { %v1049_v45 = vadd.f32 %v1047_v32, %v1041_v49 }
 0x5e5   :  { %1978 = vrcp.f32 %v1049_v45  ;;  %v1075_v56 = vand.u32 2147483648, %v1049_v45  ;;  %v1073_v59 = vand.u32 2147483647, %v1049_v45  ;;  %vm1069_vm6 = vweird.f32 %v1049_v45 }
 0x5e7   :  { %v1076_v60 = vor.u32 1.1754944e-38, %v1075_v56  ;;  %vm1074_vm8 = vcmp.eq.f32.partialorder %v1073_v59, 8.507059e+37 }
 0x5eb   :  { %v1979_v50 = vpop.eup %1978 }
 0x5ec   :  { %v1065_v21 = vmul.f32 %v1979_v50, %v1049_v45  ;;  %vm1070_vm5 = vweird.f32 %v1979_v50 }
 0x5ed   :  { %vm1071_vm7 = vmor %vm1069_vm6, %vm1070_vm5 }
 0x5ee   :  { %v1066_v47 = vsub.f32 1.0, %v1065_v21 }
 0x5f0   :  { %v1067_v27 = vmul.f32 %v1979_v50, %v1066_v47 }
 0x5f2   :  { %v1068_v43 = vadd.f32 %v1979_v50, %v1067_v27 }
 0x5f4   :  { %v1072_v63 = vsel %vm1071_vm7, %v1979_v50, %v1068_v43 }
 0x5f5   :  { %v1077_v12 = vsel %vm1074_vm8, %v1076_v60, %v1072_v63 }
 0x5f6   :  { %v1199_v24 = vmul.f32 %v2585_v58, %v1077_v12 }
 0x5f8   :  { %1855 = vmatmul.msk.f32.gmra.mxu3 %vm154_vm1, %v1199_v24 }
 0x5fa   :  { %v1354_v1 = vpop.xlane.xlu2 %1353 }
 0x5fb   :  { %v1360_v10 = vpop.xlane.xlu1 %1359 }
 0x5fc   :  { %v1364_v20 = vadd.f32 %v1360_v10, %v1354_v1  ;;  %v1903_v10 = vld [vmem:[#allocation10] ss:$0 sm:$0xff] }
 0x602   :  { %v1368_v7 = vpop.xlane.xlu2 %1367 }
 0x603   :  { %v1372_v42 = vadd.f32 %v1368_v7, %v1364_v20  ;;  %v1357_v9 = vpop.xlane.xlu0 %1356  ;;  %v1540_v7 = vadd.f32 %v1992_v4, %v1903_v10 }
 0x604   :  { %v359_v54 = vpop.xlane.xlu1 %358  ;;  %v1433_v33 = vpop.f32.mrf.mxu1 }
 0x605   :  { %v361_v11 = vadd.f32 %v359_v54, %v353_v37 }
 0x606   :  { %v1522_v40 = vpop.f32.mrf.mxu0 }
 0x607   :  { %1980 = vrcp.f32 %v361_v11  ;;  %v387_v5 = vand.u32 2147483648, %v361_v11  ;;  %v385_v28 = vand.u32 2147483647, %v361_v11  ;;  %vm381_vm10 = vweird.f32 %v361_v11 }
 0x609   :  { %v1462_v3 = vpop.f32.mrf.mxu2  ;;  %v388_v57 = vor.u32 1.1754944e-38, %v387_v5  ;;  %vm386_vm12 = vcmp.eq.f32.partialorder %v385_v28, 8.507059e+37 }
 0x60a   :  { %v1376_v48 = vpop.xlane.xlu2 %1375  ;;  %v1463_v36 = vadd.f32 %v1462_v3, %v1433_v33 }
 0x60b   :  { %v1380_v29 = vadd.f32 %v1376_v48, %v1372_v42  ;;  %v1491_v52 = vpop.f32.mrf.mxu3  ;;  %v1379_v14 = vpop.xlane.xlu0 %1378 }
 0x60c   :  { %v1371_v13 = vpop.xlane.xlu1 %1370  ;;  %v1497_v55 = vadd.f32 %v1491_v52, %v1463_v36  ;;  %v1436_v50 = vpop.f32.mrf.mxu1 }
 0x60d   :  { %v1981_v6 = vpop.eup %1980  ;;  %1982 = vrcp.f32 %v1380_v29  ;;  %v1393_v46 = vand.u32 2147483648, %v1380_v29  ;;  %v1391_v38 = vand.u32 2147483647, %v1380_v29  ;;  %vm1387_vm14 = vweird.f32 %v1380_v29 }
 0x60e   :  { %v377_v58 = vmul.f32 %v1981_v6, %v361_v11  ;;  %vm382_vm9 = vweird.f32 %v1981_v6  ;;  %v1528_v23 = vadd.f32 %v1522_v40, %v1497_v55  ;;  %v1525_v60 = vpop.f32.mrf.mxu0 }
 0x60f   :  { %vm383_vm11 = vmor %vm381_vm10, %vm382_vm9  ;;  %v1394_v44 = vor.u32 1.1754944e-38, %v1393_v46  ;;  %vm1392_vm2 = vcmp.eq.f32.partialorder %v1391_v38, 8.507059e+37 }
 0x610   :  { %v378_v8 = vsub.f32 1.0, %v377_v58 }
 0x611   :  { %v1465_v39 = vpop.f32.mrf.mxu2 }
 0x612   :  { %v1363_v22 = vpop.xlane.xlu2 %1362  ;;  %v379_v25 = vmul.f32 %v1981_v6, %v378_v8  ;;  %v1466_v21 = vadd.f32 %v1465_v39, %v1436_v50 }
 0x613   :  { %v1983_v30 = vpop.eup %1982  ;;  %v1365_v31 = vadd.f32 %v1363_v22, %v1357_v9  ;;  %v1494_v56 = vpop.f32.mrf.mxu3 }
 0x614   :  { %v1383_v15 = vmul.f32 %v1983_v30, %v1380_v29  ;;  %v380_v16 = vadd.f32 %v1981_v6, %v379_v25  ;;  %vm1388_vm13 = vweird.f32 %v1983_v30  ;;  %v1498_v59 = vadd.f32 %v1494_v56, %v1466_v21  ;;  %v1993_v29 = vld [vmem:[#allocation2 + $0x8] sm:$0xff]  ;;  %v1904_v56 = vld [vmem:[%s2723_s6] ss:$0 sm:$0xff]  ;;  %s2165_s6 = smov [#allocation11]  }
 0x615   :  { %v1373_v18 = vadd.f32 %v1371_v13, %v1365_v31  ;;  %vm1389_vm15 = vmor %vm1387_vm14, %vm1388_vm13  ;;  %v1541_v9 = vadd.f32 %v1993_v29, %v1903_v10  ;;  %s1735_s21 = sshll.u32 %s2165_s6, 4  ;;  %s1736_s21 = int_to_ptr.vmem [resolvable:$true] %s1735_s21 }
 0x616   :  { %v1384_v53 = vsub.f32 1.0, %v1383_v15  ;;  %v384_v51 = vsel %vm383_vm11, %v1981_v6, %v380_v16  ;;  %v1529_v12 = vadd.f32 %v1525_v60, %v1498_v59  ;;  %v2164_v15 = vmov 32.0  }
 0x617   :  { %v1381_v34 = vadd.f32 %v1379_v14, %v1373_v18  ;;  %v389_v19 = vsel %vm386_vm12, %v388_v57, %v384_v51 }
 0x618   :  { %v1385_v35 = vmul.f32 %v1983_v30, %v1384_v53  ;;  %v535_v41 = vmul.f32 %v2431_v0, %v389_v19 }
 0x619   :  { %1984 = vrcp.f32 %v1381_v34  ;;  %v1407_v27 = vand.u32 2147483648, %v1381_v34  ;;  %v1405_v43 = vand.u32 2147483647, %v1381_v34  ;;  %vm1401_vm4 = vweird.f32 %v1381_v34 }
 0x61a   :  { %v1386_v26 = vadd.f32 %v1983_v30, %v1385_v35  ;;  %1851 = vmatmul.msk.f32.gmra.mxu1 %vm154_vm1, %v535_v41  ;;  %1986 = vrcp.f32 %v2164_v15 }
 0x61b   :  { %v1408_v63 = vor.u32 1.1754944e-38, %v1407_v27  ;;  %vm1406_vm6 = vcmp.eq.f32.partialorder %v1405_v43, 8.507059e+37  ;;  %v1905_v43 = vld [vmem:[%s2724_s7] ss:$0 sm:$0xff]  ;;  %s1737_s7 = sshll.u32 %s2725_s8, 4  ;;  %s1738_s7 = int_to_ptr.hbm [resolvable:$true] %s1737_s7 }
 0x61c   :  { %v1390_v17 = vsel %vm1389_vm15, %v1983_v30, %v1386_v26 }
 0x61d   :  { %v1395_v49 = vsel %vm1392_vm2, %v1394_v44, %v1390_v17 }
 0x61e   :  { %v1530_v32 = vmul.f32 %v1528_v23, %v1395_v49 }
 0x61f   :  { %v1985_v45 = vpop.eup %1984 }
 0x620   :  { %1856 = vmatmul.msk.f32.vlgmr.msrb.gmra.mxu0 %vm154_vm1, %v1530_v32  ;;  %v1397_v0 = vmul.f32 %v1985_v45, %v1381_v34  ;;  %vm1402_vm3 = vweird.f32 %v1985_v45  ;;  %v1987_v13 = vpop.eup %1986 }
 0x621   :  { %vm1403_vm5 = vmor %vm1401_vm4, %vm1402_vm3  ;;  %v1673_v16 = vmul.f32 32.0, %v1987_v13 }
 0x622   :  { %v1398_v47 = vsub.f32 1.0, %v1397_v0 }
 0x623   :  { %v1674_v18 = vsub.f32 1.0, %v1673_v16 }
 0x624   :  { %v1399_v61 = vmul.f32 %v1985_v45, %v1398_v47 }
 0x625   :  { %v1675_v57 = vmul.f32 %v1987_v13, %v1674_v18 }
 0x626   :  { %v1400_v62 = vadd.f32 %v1985_v45, %v1399_v61 }
 0x627   :  { %v1676_v52 = vadd.f32 %v1987_v13, %v1675_v57 }
 0x628   :  { %v1404_v24 = vsel %vm1403_vm5, %v1985_v45, %v1400_v62 }
 0x629   :  { %v1409_v1 = vsel %vm1406_vm6, %v1408_v63, %v1404_v24 }
 0x62a   :  { %v1531_v2 = vmul.f32 %v1529_v12, %v1409_v1 }
 0x62c   :  { %1857 = vmatmul.msk.f32.gmra.mxu0 %vm154_vm1, %v1531_v2  ;;  %vm1677_vm1 = vweird.f32 %v1987_v13 }
 0x62d   :  { %v1678_v53 = vsel %vm1677_vm1, %v1987_v13, %v1676_v52 }
 0x62f   :  { %v1596_v11 = vpop.f32.mrf.mxu2 }
 0x641   :  { %v1565_v37 = vpop.f32.mrf.mxu1 }
 0x642   :  { %v1571_v54 = vadd.f32 %v1565_v37, %v1540_v7 }
 0x644   :  { %v1602_v42 = vadd.f32 %v1596_v11, %v1571_v54 }
 0x653   :  { %v1627_v20 = vpop.f32.mrf.mxu3 }
 0x654   :  { %v1633_v48 = vadd.f32 %v1627_v20, %v1602_v42 }
 0x65f   :  { %v1599_v33 = vpop.f32.mrf.mxu2 }
 0x67b   :  { %v1630_v25 = vpop.f32.mrf.mxu3 }
 0x697   :  { %v1568_v6 = vpop.f32.mrf.mxu1 }
 0x698   :  { %v1572_v3 = vadd.f32 %v1568_v6, %v1541_v9 }
 0x69a   :  { %v1603_v22 = vadd.f32 %v1599_v33, %v1572_v3 }
 0x69c   :  { %v1634_v28 = vadd.f32 %v1630_v25, %v1603_v22 }
 0x69d   :  { %v1658_v58 = vpop.f32.mrf.mxu0 }
 0x69e   :  { %v1664_v8 = vadd.f32 %v1658_v58, %v1633_v48 }
 0x6a0   :  { %v1666_v5 = vsel %vm116_vm0, %v1664_v8, 0.0 }
 0x6a1   :  { %1667 = vadd.xlane.f32.xlu2 %v1666_v5 }
 0x6a9   :  { %v1661_v30 = vpop.f32.mrf.mxu0 }
 0x6aa   :  { %v1665_v36 = vadd.f32 %v1661_v30, %v1634_v28 }
 0x6ac   :  { %v1669_v31 = vsel %vm116_vm0, %v1665_v36, 0.0 }
 0x6ad   :  { %1670 = vadd.xlane.f32.xlu1 %v1669_v31 }
 0x714   :  { %v1668_v14 = vpop.xlane.xlu2 %1667 }
 0x715   :  { %v1679_v51 = vmul.f32 %v1678_v53, %v1668_v14 }
 0x717   :  { %v1681_v55 = vsub.f32 %v1664_v8, %v1679_v51 }
 0x719   :  { %v1683_v46 = vmul.f32 %v1681_v55, %v1681_v55 }
 0x71b   :  { %v1685_v34 = vsel %vm116_vm0, %v1683_v46, 0.0 }
 0x71c   :  { %1686 = vadd.xlane.f32.xlu0 %v1685_v34 }
 0x720   :  { %v1671_v19 = vpop.xlane.xlu1 %1670 }
 0x721   :  { %v1680_v35 = vmul.f32 %v1678_v53, %v1671_v19 }
 0x723   :  { %v1682_v38 = vsub.f32 %v1665_v36, %v1680_v35 }
 0x725   :  { %v1684_v41 = vmul.f32 %v1682_v38, %v1682_v38 }
 0x727   :  { %v1688_v26 = vsel %vm116_vm0, %v1684_v41, 0.0 }
 0x728   :  { %1689 = vadd.xlane.f32.xlu2 %v1688_v26 }
 0x78f   :  { %v1687_v40 = vpop.xlane.xlu0 %1686 }
 0x790   :  { %v1691_v44 = vmul.f32 %v1687_v40, %v1678_v53 }
 0x792   :  { %v1693_v23 = vadd.f32 1e-05, %v1691_v44 }
 0x794   :  { %1988 = vrsqrt.f32 %v1693_v23  ;;  %vm1701_vm8 = vweird.f32 %v1693_v23 }
 0x79a   :  { %v1989_v17 = vpop.eup %1988 }
 0x79b   :  { %v1696_v39 = vmul.f32 %v1989_v17, %v1693_v23  ;;  %v1690_v49 = vpop.xlane.xlu2 %1689  ;;  %vm1702_vm7 = vweird.f32 %v1989_v17 }
 0x79c   :  { %v1692_v32 = vmul.f32 %v1690_v49, %v1678_v53  ;;  %vm1703_vm9 = vmor %vm1701_vm8, %vm1702_vm7 }
 0x79d   :  { %v1697_v45 = vmul.f32 %v1989_v17, %v1696_v39 }
 0x79e   :  { %v1694_v50 = vadd.f32 1e-05, %v1692_v32 }
 0x79f   :  { %v1698_v21 = vmul.f32 0.5, %v1697_v45 }
 0x7a0   :  { %1990 = vrsqrt.f32 %v1694_v50  ;;  %vm1711_vm11 = vweird.f32 %v1694_v50 }
 0x7a1   :  { %v1699_v0 = vsub.f32 1.5, %v1698_v21 }
 0x7a3   :  { %v1700_v47 = vmul.f32 %v1989_v17, %v1699_v0 }
 0x7a5   :  { %v1704_v27 = vsel %vm1703_vm9, %v1989_v17, %v1700_v47 }
 0x7a6   :  { %v1991_v59 = vpop.eup %1990  ;;  %v1715_v61 = vmul.f32 %v1704_v27, %v1681_v55 }
 0x7a7   :  { %v1706_v62 = vmul.f32 %v1991_v59, %v1694_v50  ;;  %vm1712_vm10 = vweird.f32 %v1991_v59 }
 0x7a8   :  { %v1721_v60 = vmul.f32 %v1904_v56, %v1715_v61  ;;  %vm1713_vm12 = vmor %vm1711_vm11, %vm1712_vm10 }
 0x7a9   :  { %v1707_v63 = vmul.f32 %v1991_v59, %v1706_v62 }
 0x7aa   :  { %v1727_v12 = vadd.f32 %v1905_v43, %v1721_v60 }
 0x7ab   :  { %v1708_v24 = vmul.f32 0.5, %v1707_v63 }
 0x7ac   :  { %1729 = vst.msk [vmem:[#allocation11] sm:$0xff] %vm116_vm0, %v1727_v12 }
 0x7ad   :  { %v1709_v1 = vsub.f32 1.5, %v1708_v24 }
 0x7af   :  { %v1710_v2 = vmul.f32 %v1991_v59, %v1709_v1 }
 0x7b1   :  { %v1714_v10 = vsel %vm1713_vm12, %v1991_v59, %v1710_v2 }
 0x7b2   :  { %v1716_v4 = vmul.f32 %v1714_v10, %v1682_v38 }
 0x7b4   :  { %v1722_v7 = vmul.f32 %v1904_v56, %v1716_v4 }
 0x7b6   :  { %v1728_v37 = vadd.f32 %v1905_v43, %v1722_v7 }
 0x7b8   :  { %1730 = vst.msk [vmem:[#allocation11 + $0x8] sm:$0xff] %vm116_vm0, %v1728_v37 }
 0x7b9   :  { %1743 = dma.vmem_to_hbm [thread:$0]  %s1736_s21, 256, %s1738_s7, [#allocation4], %s2147_s13, %s2147_s13, %s2148_s14  }
 0x7ba   :  { %2144 = dma.done.wait [#allocation4], 256  }
 0x7bb   :  { %2145 = vsyncadd [#allocation4], 4294967040 }
 0x7bc   :  { %1748 = vsyncpa [#allocation3], 1 }
 0x7bd   :  { %1749 = vsyncpa [#allocation6], 1 }
 0x7be   :  { %1750 = vsyncpa [#allocation9], 1 }
 0x7bf   :  { %1751 = vsyncpa [#allocation4], 1 }

</bundles_post_ra>
